<compile_context>
chip_gen: v6e
topology: v6e:2x2x1
jax: 0.10.0
libtpu: 0.0.40
codegen_flags: <defaults>
</compile_context>

<pallas_src>
import math

import jax
import jax.numpy as jnp
from jax import lax
from jax.experimental import pallas as pl
from jax.experimental.pallas import tpu as pltpu

# Problem sizes (small, synthetic)
B = 4     # batch
N = 10    # padded sequence length
E = 32    # embedding_dim
D = 32    # text_dim (LSTM hidden size)
V = 50    # vocab_size
PAD = 0   # padding_idx


def lstm_attn_kernel(x_ref, len_b1_ref, len_1b_ref, wih_ref, whh_ref, b_ref,
                     wattn_ref, feat_ref, attn_ref, rnn_ref):
    n_steps, b_sz, d = rnn_ref.shape
    len_b1 = len_b1_ref[...]                                  # (B, 1) int32

    # Hoisted input projection (+ fused bias) for ALL timesteps: one MXU
    # matmul (N*B, E) @ (E, 4D), done once outside the serial recurrence.
    gx = jnp.dot(x_ref[...], wih_ref[...],
                 preferred_element_type=jnp.float32) + b_ref[...]   # (N*B, 4D)

    whh = whh_ref[...]                                        # (D, 4D)

    h = jnp.zeros((b_sz, d), jnp.float32)
    c = jnp.zeros((b_sz, d), jnp.float32)

    # Fully unrolled recurrence: static slices / static-index stores.
    for t in range(n_steps):
        gates = gx[t * b_sz:(t + 1) * b_sz, :] + jnp.dot(
            h, whh, preferred_element_type=jnp.float32)       # (B, 4D)
        # Gate order (wrapper-reordered): i, f, o, g -> sigmoids contiguous.
        sig = jax.nn.sigmoid(gates[:, :3 * d])                # slab i|f|o
        g_g = jnp.tanh(gates[:, 3 * d:])                      # slab g
        i_g = sig[:, :d]
        f_g = sig[:, d:2 * d]
        o_g = sig[:, 2 * d:3 * d]
        c_new = f_g * c + i_g * g_g
        h_new = o_g * jnp.tanh(c_new)

        valid = t < len_b1                                    # (B, 1) bool
        h = jnp.where(valid, h_new, h)                        # freeze padded
        c = jnp.where(valid, c_new, c)
        rnn_ref[t] = jnp.where(valid, h_new, 0.0)             # padded -> 0

    # Diagonal bilinear attention: score[t,b] = sum_d R[t,b,d]*w_attn[d]*h[b,d]
    R = rnn_ref[...]                                          # (N, B, D)
    scaled_h = wattn_ref[...] * h                             # (B, D)
    score = jnp.sum(R * scaled_h[None, :, :], axis=-1)        # (N, B)

    t_idx = lax.broadcasted_iota(jnp.int32, (n_steps, b_sz), 0)
    mask = t_idx < len_1b_ref[...]                            # (N, B)
    score = jnp.where(mask, score, -1.0e9)

    m = jnp.max(score, axis=0, keepdims=True)
    e_s = jnp.exp(score - m)
    attn_nb = e_s / jnp.sum(e_s, axis=0, keepdims=True)       # (N, B)

    feat_ref[...] = jnp.sum(R * attn_nb[:, :, None], axis=0)  # (B, D)
    attn_ref[...] = jnp.transpose(attn_nb, (1, 0))            # (B, N)


def lstm_forward(padded_tokens, params):
    emb = params["emb"]
    W_ih, W_hh = params["W_ih"], params["W_hh"]
    b_ih, b_hh = params["b_ih"], params["b_hh"]
    w_attn = params["w_attn"]

    B_, N_ = padded_tokens.shape
    D_ = W_hh.shape[1]
    E_ = W_ih.shape[1]

    # Time-major embedding gather (no separate transpose op); eval-mode
    # dropout is the identity.
    x_tm = emb[padded_tokens.T].astype(jnp.float32)           # (N, B, E)
    x_flat = x_tm.reshape(N_ * B_, E_)                        # (N*B, E)

    len_seq = jnp.sum(padded_tokens != PAD, axis=1).astype(jnp.int32)
    len_b1 = len_seq.reshape(B_, 1)
    len_1b = len_seq.reshape(1, B_)

    # Reorder PyTorch gate stacking (i, f, g, o) -> (i, f, o, g) so the three
    # sigmoid gates occupy a contiguous 3D-wide slab of lanes.
    def reorder_gates(a):
        i, f, g, o = jnp.split(a, 4, axis=0)
        return jnp.concatenate([i, f, o, g], axis=0)

    wih_t = reorder_gates(W_ih).T.astype(jnp.float32)         # (E, 4D)
    whh_t = reorder_gates(W_hh).T.astype(jnp.float32)         # (D, 4D)
    bias = reorder_gates(b_ih + b_hh).reshape(1, 4 * D_).astype(jnp.float32)

    vmem = pl.BlockSpec(memory_space=pltpu.MemorySpace.VMEM)
    feat, attn = pl.pallas_call(
        lstm_attn_kernel,
        out_shape=(jax.ShapeDtypeStruct((B_, D_), jnp.float32),
                   jax.ShapeDtypeStruct((B_, N_), jnp.float32)),
        in_specs=[vmem] * 7,
        out_specs=(vmem, vmem),
        scratch_shapes=[pltpu.VMEM((N_, B_, D_), jnp.float32)],
    )(x_flat, len_b1, len_1b, wih_t, whh_t, bias,
      w_attn.astype(jnp.float32))

    return feat, attn                                         # (B, D), (B, N)


def ref_forward(padded_tokens, params):
    """Pure-JAX reference with identical semantics (original gate order)."""
    emb = params["emb"]
    W_ih, W_hh = params["W_ih"], params["W_hh"]
    b_ih, b_hh = params["b_ih"], params["b_hh"]
    w_attn = params["w_attn"]

    x = emb[padded_tokens].astype(jnp.float32)                # (B, N, E)
    lens = jnp.sum(padded_tokens != PAD, axis=1)
    B_, N_, _ = x.shape
    D_ = W_hh.shape[1]

    def step(carry, t):
        h, c = carry
        x_t = x[:, t, :]
        gates = x_t @ W_ih.T + h @ W_hh.T + b_ih + b_hh
        i = jax.nn.sigmoid(gates[:, :D_])
        f = jax.nn.sigmoid(gates[:, D_:2 * D_])
        g = jnp.tanh(gates[:, 2 * D_:3 * D_])
        o = jax.nn.sigmoid(gates[:, 3 * D_:])
        c_new = f * c + i * g
        h_new = o * jnp.tanh(c_new)
        valid = (t < lens)[:, None]
        h = jnp.where(valid, h_new, h)
        c = jnp.where(valid, c_new, c)
        return (h, c), jnp.where(valid, h_new, 0.0)

    (h_final, _), outs = lax.scan(
        step,
        (jnp.zeros((B_, D_), jnp.float32), jnp.zeros((B_, D_), jnp.float32)),
        jnp.arange(N_))
    R = jnp.transpose(outs, (1, 0, 2))                        # (B, N, D)
    score = jnp.einsum("bnd,bd->bn", R * w_attn[None], h_final)
    mask = jnp.arange(N_)[None, :] < lens[:, None]
    score = jnp.where(mask, score, -1.0e9)
    attn = jax.nn.softmax(score, axis=1)
    feat = jnp.einsum("bnd,bn->bd", R, attn)
    return feat, attn


if __name__ == "__main__":
    key = jax.random.PRNGKey(0)
    ks = jax.random.split(key, 8)

    # Deterministic parameter init (shapes follow the PyTorch module).
    emb = jax.random.normal(ks[0], (V, E), jnp.float32) * 0.1
    emb = emb.at[PAD].set(0.0)                                # padding_idx row
    stdv = 1.0 / math.sqrt(D)
    W_ih = jax.random.uniform(ks[1], (4 * D, E), jnp.float32, -stdv, stdv)
    W_hh = jax.random.uniform(ks[2], (4 * D, D), jnp.float32, -stdv, stdv)
    b_ih = jax.random.uniform(ks[3], (4 * D,), jnp.float32, -stdv, stdv)
    b_hh = jax.random.uniform(ks[4], (4 * D,), jnp.float32, -stdv, stdv)
    xav = math.sqrt(6.0 / (1 + D))                            # xavier_uniform
    w_attn = jax.random.uniform(ks[5], (1, D), jnp.float32, -xav, xav)

    params = dict(emb=emb, W_ih=W_ih, W_hh=W_hh, b_ih=b_ih, b_hh=b_hh,
                  w_attn=w_attn)

    # Right-padded tokens; sequence 0 is full length so N_out == N.
    lengths = jnp.array([N, 7, 4, 9], dtype=jnp.int32)
    tok_vals = jax.random.randint(ks[6], (B, N), 1, V)
    pos = jnp.arange(N)[None, :]
    padded_tokens = jnp.where(pos < lengths[:, None], tok_vals, PAD).astype(jnp.int32)

    feat, attn = lstm_forward(padded_tokens, params)
    jax.block_until_ready((feat, attn))

    ref_feat, ref_attn = ref_forward(padded_tokens, params)
    assert jnp.allclose(feat, ref_feat, rtol=1e-4, atol=1e-4), "final_feat mismatch"
    assert jnp.allclose(attn, ref_attn, rtol=1e-4, atol=1e-4), "attn mismatch"

    print("KERNEL_OK")
</pallas_src>

<mosaic_0001>
module attributes {stable_mosaic.version = 11 : i64} {
  func.func @lstm_attn_kernel(%arg0: memref<40x32xf32, #tpu.memory_space<vmem>>, %arg1: memref<4x1xi32, #tpu.memory_space<vmem>>, %arg2: memref<1x4xi32, #tpu.memory_space<vmem>>, %arg3: memref<32x128xf32, #tpu.memory_space<vmem>>, %arg4: memref<32x128xf32, #tpu.memory_space<vmem>>, %arg5: memref<1x128xf32, #tpu.memory_space<vmem>>, %arg6: memref<1x32xf32, #tpu.memory_space<vmem>>, %arg7: memref<4x32xf32, #tpu.memory_space<vmem>>, %arg8: memref<4x10xf32, #tpu.memory_space<vmem>>, %arg9: memref<10x4x32xf32, #tpu.memory_space<vmem>>) attributes {dimension_semantics = [], scalar_prefetch = 0 : i64, scratch_operands = 1 : i64, tpu.core_type = #tpu.core_type<tc>} {
    %c0 = arith.constant 0 : index
    %c0_0 = arith.constant 0 : index
    %0 = vector.load %arg1[%c0, %c0_0] : memref<4x1xi32, #tpu.memory_space<vmem>>, vector<4x1xi32>
    %c0_1 = arith.constant 0 : index
    %c0_2 = arith.constant 0 : index
    %1 = vector.load %arg0[%c0_1, %c0_2] : memref<40x32xf32, #tpu.memory_space<vmem>>, vector<40x32xf32>
    %c0_3 = arith.constant 0 : index
    %c0_4 = arith.constant 0 : index
    %2 = vector.load %arg3[%c0_3, %c0_4] : memref<32x128xf32, #tpu.memory_space<vmem>>, vector<32x128xf32>
    %cst = arith.constant dense<0.000000e+00> : vector<40x128xf32>
    %3 = tpu.matmul %1, %2, %cst {dimension_numbers = #tpu.dot_dimension_numbers<[1], [0], [0], [1], [0, 0, 1, 1], [], []>} : vector<40x32xf32>, vector<32x128xf32>, vector<40x128xf32> -> vector<40x128xf32>
    %c0_5 = arith.constant 0 : index
    %c0_6 = arith.constant 0 : index
    %4 = vector.load %arg5[%c0_5, %c0_6] : memref<1x128xf32, #tpu.memory_space<vmem>>, vector<1x128xf32>
    %5 = vector.broadcast %4 : vector<1x128xf32> to vector<40x128xf32>
    %6 = arith.addf %3, %5 : vector<40x128xf32>
    %c0_7 = arith.constant 0 : index
    %c0_8 = arith.constant 0 : index
    %7 = vector.load %arg4[%c0_7, %c0_8] : memref<32x128xf32, #tpu.memory_space<vmem>>, vector<32x128xf32>
    %cst_9 = arith.constant 0.000000e+00 : f32
    %8 = vector.broadcast %cst_9 : f32 to vector<4x32xf32>
    %cst_10 = arith.constant 0.000000e+00 : f32
    %9 = vector.broadcast %cst_10 : f32 to vector<4x32xf32>
    %10 = vector.extract_strided_slice %6 {offsets = [0, 0], sizes = [4, 128], strides = [1, 1]} : vector<40x128xf32> to vector<4x128xf32>
    %cst_11 = arith.constant dense<0.000000e+00> : vector<4x128xf32>
    %11 = tpu.matmul %8, %7, %cst_11 {dimension_numbers = #tpu.dot_dimension_numbers<[1], [0], [0], [1], [0, 0, 1, 1], [], []>} : vector<4x32xf32>, vector<32x128xf32>, vector<4x128xf32> -> vector<4x128xf32>
    %12 = arith.addf %10, %11 : vector<4x128xf32>
    %13 = vector.extract_strided_slice %12 {offsets = [0, 0], sizes = [4, 96], strides = [1, 1]} : vector<4x128xf32> to vector<4x96xf32>
    %14 = arith.negf %13 : vector<4x96xf32>
    %15 = math.exp %14 : vector<4x96xf32>
    %cst_12 = arith.constant 1.000000e+00 : f32
    %16 = vector.broadcast %cst_12 : f32 to vector<4x96xf32>
    %17 = arith.addf %16, %15 : vector<4x96xf32>
    %18 = arith.divf %16, %17 : vector<4x96xf32>
    %19 = vector.extract_strided_slice %12 {offsets = [0, 96], sizes = [4, 32], strides = [1, 1]} : vector<4x128xf32> to vector<4x32xf32>
    %20 = math.tanh %19 : vector<4x32xf32>
    %21 = vector.extract_strided_slice %18 {offsets = [0, 0], sizes = [4, 32], strides = [1, 1]} : vector<4x96xf32> to vector<4x32xf32>
    %22 = vector.extract_strided_slice %18 {offsets = [0, 32], sizes = [4, 32], strides = [1, 1]} : vector<4x96xf32> to vector<4x32xf32>
    %23 = vector.extract_strided_slice %18 {offsets = [0, 64], sizes = [4, 32], strides = [1, 1]} : vector<4x96xf32> to vector<4x32xf32>
    %24 = arith.mulf %22, %9 : vector<4x32xf32>
    %25 = arith.mulf %21, %20 : vector<4x32xf32>
    %26 = arith.addf %24, %25 : vector<4x32xf32>
    %27 = math.tanh %26 : vector<4x32xf32>
    %28 = arith.mulf %23, %27 : vector<4x32xf32>
    %c0_i32 = arith.constant 0 : i32
    %29 = vector.broadcast %c0_i32 : i32 to vector<4x1xi32>
    %30 = arith.cmpi sgt, %0, %29 : vector<4x1xi32>
    %31 = vector.shape_cast %30 : vector<4x1xi1> to vector<4x1xi1>
    %32 = vector.broadcast %31 : vector<4x1xi1> to vector<4x32xi1>
    %33 = arith.select %32, %28, %8 : vector<4x32xi1>, vector<4x32xf32>
    %34 = vector.shape_cast %30 : vector<4x1xi1> to vector<4x1xi1>
    %35 = vector.broadcast %34 : vector<4x1xi1> to vector<4x32xi1>
    %36 = arith.select %35, %26, %9 : vector<4x32xi1>, vector<4x32xf32>
    %cst_13 = arith.constant 0.000000e+00 : f32
    %37 = vector.shape_cast %30 : vector<4x1xi1> to vector<4x1xi1>
    %38 = vector.broadcast %37 : vector<4x1xi1> to vector<4x32xi1>
    %39 = vector.broadcast %cst_13 : f32 to vector<4x32xf32>
    %40 = arith.select %38, %28, %39 : vector<4x32xi1>, vector<4x32xf32>
    %c0_14 = arith.constant 0 : index
    %c0_15 = arith.constant 0 : index
    %c0_16 = arith.constant 0 : index
    %41 = vector.load %arg9[%c0_14, %c0_15, %c0_16] : memref<10x4x32xf32, #tpu.memory_space<vmem>>, vector<1x4x32xf32>
    %42 = vector.shape_cast %41 : vector<1x4x32xf32> to vector<4x32xf32>
    %43 = vector.shape_cast %40 : vector<4x32xf32> to vector<1x4x32xf32>
    tpu.vector_store %arg9[%c0_14, %c0_15, %c0_16], %43 {strides = array<i32>} : memref<10x4x32xf32, #tpu.memory_space<vmem>>, vector<1x4x32xf32>,
    %44 = vector.extract_strided_slice %6 {offsets = [4, 0], sizes = [4, 128], strides = [1, 1]} : vector<40x128xf32> to vector<4x128xf32>
    %cst_17 = arith.constant dense<0.000000e+00> : vector<4x128xf32>
    %45 = tpu.matmul %33, %7, %cst_17 {dimension_numbers = #tpu.dot_dimension_numbers<[1], [0], [0], [1], [0, 0, 1, 1], [], []>} : vector<4x32xf32>, vector<32x128xf32>, vector<4x128xf32> -> vector<4x128xf32>
    %46 = arith.addf %44, %45 : vector<4x128xf32>
    %47 = vector.extract_strided_slice %46 {offsets = [0, 0], sizes = [4, 96], strides = [1, 1]} : vector<4x128xf32> to vector<4x96xf32>
    %48 = arith.negf %47 : vector<4x96xf32>
    %49 = math.exp %48 : vector<4x96xf32>
    %cst_18 = arith.constant 1.000000e+00 : f32
    %50 = vector.broadcast %cst_18 : f32 to vector<4x96xf32>
    %51 = arith.addf %50, %49 : vector<4x96xf32>
    %52 = arith.divf %50, %51 : vector<4x96xf32>
    %53 = vector.extract_strided_slice %46 {offsets = [0, 96], sizes = [4, 32], strides = [1, 1]} : vector<4x128xf32> to vector<4x32xf32>
    %54 = math.tanh %53 : vector<4x32xf32>
    %55 = vector.extract_strided_slice %52 {offsets = [0, 0], sizes = [4, 32], strides = [1, 1]} : vector<4x96xf32> to vector<4x32xf32>
    %56 = vector.extract_strided_slice %52 {offsets = [0, 32], sizes = [4, 32], strides = [1, 1]} : vector<4x96xf32> to vector<4x32xf32>
    %57 = vector.extract_strided_slice %52 {offsets = [0, 64], sizes = [4, 32], strides = [1, 1]} : vector<4x96xf32> to vector<4x32xf32>
    %58 = arith.mulf %56, %36 : vector<4x32xf32>
    %59 = arith.mulf %55, %54 : vector<4x32xf32>
    %60 = arith.addf %58, %59 : vector<4x32xf32>
    %61 = math.tanh %60 : vector<4x32xf32>
    %62 = arith.mulf %57, %61 : vector<4x32xf32>
    %c1_i32 = arith.constant 1 : i32
    %63 = vector.broadcast %c1_i32 : i32 to vector<4x1xi32>
    %64 = arith.cmpi sgt, %0, %63 : vector<4x1xi32>
    %65 = vector.shape_cast %64 : vector<4x1xi1> to vector<4x1xi1>
    %66 = vector.broadcast %65 : vector<4x1xi1> to vector<4x32xi1>
    %67 = arith.select %66, %62, %33 : vector<4x32xi1>, vector<4x32xf32>
    %68 = vector.shape_cast %64 : vector<4x1xi1> to vector<4x1xi1>
    %69 = vector.broadcast %68 : vector<4x1xi1> to vector<4x32xi1>
    %70 = arith.select %69, %60, %36 : vector<4x32xi1>, vector<4x32xf32>
    %cst_19 = arith.constant 0.000000e+00 : f32
    %71 = vector.shape_cast %64 : vector<4x1xi1> to vector<4x1xi1>
    %72 = vector.broadcast %71 : vector<4x1xi1> to vector<4x32xi1>
    %73 = vector.broadcast %cst_19 : f32 to vector<4x32xf32>
    %74 = arith.select %72, %62, %73 : vector<4x32xi1>, vector<4x32xf32>
    %c1 = arith.constant 1 : index
    %c0_20 = arith.constant 0 : index
    %c0_21 = arith.constant 0 : index
    %75 = vector.load %arg9[%c1, %c0_20, %c0_21] : memref<10x4x32xf32, #tpu.memory_space<vmem>>, vector<1x4x32xf32>
    %76 = vector.shape_cast %75 : vector<1x4x32xf32> to vector<4x32xf32>
    %77 = vector.shape_cast %74 : vector<4x32xf32> to vector<1x4x32xf32>
    tpu.vector_store %arg9[%c1, %c0_20, %c0_21], %77 {strides = array<i32>} : memref<10x4x32xf32, #tpu.memory_space<vmem>>, vector<1x4x32xf32>,
    %78 = vector.extract_strided_slice %6 {offsets = [8, 0], sizes = [4, 128], strides = [1, 1]} : vector<40x128xf32> to vector<4x128xf32>
    %cst_22 = arith.constant dense<0.000000e+00> : vector<4x128xf32>
    %79 = tpu.matmul %67, %7, %cst_22 {dimension_numbers = #tpu.dot_dimension_numbers<[1], [0], [0], [1], [0, 0, 1, 1], [], []>} : vector<4x32xf32>, vector<32x128xf32>, vector<4x128xf32> -> vector<4x128xf32>
    %80 = arith.addf %78, %79 : vector<4x128xf32>
    %81 = vector.extract_strided_slice %80 {offsets = [0, 0], sizes = [4, 96], strides = [1, 1]} : vector<4x128xf32> to vector<4x96xf32>
    %82 = arith.negf %81 : vector<4x96xf32>
    %83 = math.exp %82 : vector<4x96xf32>
    %cst_23 = arith.constant 1.000000e+00 : f32
    %84 = vector.broadcast %cst_23 : f32 to vector<4x96xf32>
    %85 = arith.addf %84, %83 : vector<4x96xf32>
    %86 = arith.divf %84, %85 : vector<4x96xf32>
    %87 = vector.extract_strided_slice %80 {offsets = [0, 96], sizes = [4, 32], strides = [1, 1]} : vector<4x128xf32> to vector<4x32xf32>
    %88 = math.tanh %87 : vector<4x32xf32>
    %89 = vector.extract_strided_slice %86 {offsets = [0, 0], sizes = [4, 32], strides = [1, 1]} : vector<4x96xf32> to vector<4x32xf32>
    %90 = vector.extract_strided_slice %86 {offsets = [0, 32], sizes = [4, 32], strides = [1, 1]} : vector<4x96xf32> to vector<4x32xf32>
    %91 = vector.extract_strided_slice %86 {offsets = [0, 64], sizes = [4, 32], strides = [1, 1]} : vector<4x96xf32> to vector<4x32xf32>
    %92 = arith.mulf %90, %70 : vector<4x32xf32>
    %93 = arith.mulf %89, %88 : vector<4x32xf32>
    %94 = arith.addf %92, %93 : vector<4x32xf32>
    %95 = math.tanh %94 : vector<4x32xf32>
    %96 = arith.mulf %91, %95 : vector<4x32xf32>
    %c2_i32 = arith.constant 2 : i32
    %97 = vector.broadcast %c2_i32 : i32 to vector<4x1xi32>
    %98 = arith.cmpi sgt, %0, %97 : vector<4x1xi32>
    %99 = vector.shape_cast %98 : vector<4x1xi1> to vector<4x1xi1>
    %100 = vector.broadcast %99 : vector<4x1xi1> to vector<4x32xi1>
    %101 = arith.select %100, %96, %67 : vector<4x32xi1>, vector<4x32xf32>
    %102 = vector.shape_cast %98 : vector<4x1xi1> to vector<4x1xi1>
    %103 = vector.broadcast %102 : vector<4x1xi1> to vector<4x32xi1>
    %104 = arith.select %103, %94, %70 : vector<4x32xi1>, vector<4x32xf32>
    %cst_24 = arith.constant 0.000000e+00 : f32
    %105 = vector.shape_cast %98 : vector<4x1xi1> to vector<4x1xi1>
    %106 = vector.broadcast %105 : vector<4x1xi1> to vector<4x32xi1>
    %107 = vector.broadcast %cst_24 : f32 to vector<4x32xf32>
    %108 = arith.select %106, %96, %107 : vector<4x32xi1>, vector<4x32xf32>
    %c2 = arith.constant 2 : index
    %c0_25 = arith.constant 0 : index
    %c0_26 = arith.constant 0 : index
    %109 = vector.load %arg9[%c2, %c0_25, %c0_26] : memref<10x4x32xf32, #tpu.memory_space<vmem>>, vector<1x4x32xf32>
    %110 = vector.shape_cast %109 : vector<1x4x32xf32> to vector<4x32xf32>
    %111 = vector.shape_cast %108 : vector<4x32xf32> to vector<1x4x32xf32>
    tpu.vector_store %arg9[%c2, %c0_25, %c0_26], %111 {strides = array<i32>} : memref<10x4x32xf32, #tpu.memory_space<vmem>>, vector<1x4x32xf32>,
    %112 = vector.extract_strided_slice %6 {offsets = [12, 0], sizes = [4, 128], strides = [1, 1]} : vector<40x128xf32> to vector<4x128xf32>
    %cst_27 = arith.constant dense<0.000000e+00> : vector<4x128xf32>
    %113 = tpu.matmul %101, %7, %cst_27 {dimension_numbers = #tpu.dot_dimension_numbers<[1], [0], [0], [1], [0, 0, 1, 1], [], []>} : vector<4x32xf32>, vector<32x128xf32>, vector<4x128xf32> -> vector<4x128xf32>
    %114 = arith.addf %112, %113 : vector<4x128xf32>
    %115 = vector.extract_strided_slice %114 {offsets = [0, 0], sizes = [4, 96], strides = [1, 1]} : vector<4x128xf32> to vector<4x96xf32>
    %116 = arith.negf %115 : vector<4x96xf32>
    %117 = math.exp %116 : vector<4x96xf32>
    %cst_28 = arith.constant 1.000000e+00 : f32
    %118 = vector.broadcast %cst_28 : f32 to vector<4x96xf32>
    %119 = arith.addf %118, %117 : vector<4x96xf32>
    %120 = arith.divf %118, %119 : vector<4x96xf32>
    %121 = vector.extract_strided_slice %114 {offsets = [0, 96], sizes = [4, 32], strides = [1, 1]} : vector<4x128xf32> to vector<4x32xf32>
    %122 = math.tanh %121 : vector<4x32xf32>
    %123 = vector.extract_strided_slice %120 {offsets = [0, 0], sizes = [4, 32], strides = [1, 1]} : vector<4x96xf32> to vector<4x32xf32>
    %124 = vector.extract_strided_slice %120 {offsets = [0, 32], sizes = [4, 32], strides = [1, 1]} : vector<4x96xf32> to vector<4x32xf32>
    %125 = vector.extract_strided_slice %120 {offsets = [0, 64], sizes = [4, 32], strides = [1, 1]} : vector<4x96xf32> to vector<4x32xf32>
    %126 = arith.mulf %124, %104 : vector<4x32xf32>
    %127 = arith.mulf %123, %122 : vector<4x32xf32>
    %128 = arith.addf %126, %127 : vector<4x32xf32>
    %129 = math.tanh %128 : vector<4x32xf32>
    %130 = arith.mulf %125, %129 : vector<4x32xf32>
    %c3_i32 = arith.constant 3 : i32
    %131 = vector.broadcast %c3_i32 : i32 to vector<4x1xi32>
    %132 = arith.cmpi sgt, %0, %131 : vector<4x1xi32>
    %133 = vector.shape_cast %132 : vector<4x1xi1> to vector<4x1xi1>
    %134 = vector.broadcast %133 : vector<4x1xi1> to vector<4x32xi1>
    %135 = arith.select %134, %130, %101 : vector<4x32xi1>, vector<4x32xf32>
    %136 = vector.shape_cast %132 : vector<4x1xi1> to vector<4x1xi1>
    %137 = vector.broadcast %136 : vector<4x1xi1> to vector<4x32xi1>
    %138 = arith.select %137, %128, %104 : vector<4x32xi1>, vector<4x32xf32>
    %cst_29 = arith.constant 0.000000e+00 : f32
    %139 = vector.shape_cast %132 : vector<4x1xi1> to vector<4x1xi1>
    %140 = vector.broadcast %139 : vector<4x1xi1> to vector<4x32xi1>
    %141 = vector.broadcast %cst_29 : f32 to vector<4x32xf32>
    %142 = arith.select %140, %130, %141 : vector<4x32xi1>, vector<4x32xf32>
    %c3 = arith.constant 3 : index
    %c0_30 = arith.constant 0 : index
    %c0_31 = arith.constant 0 : index
    %143 = vector.load %arg9[%c3, %c0_30, %c0_31] : memref<10x4x32xf32, #tpu.memory_space<vmem>>, vector<1x4x32xf32>
    %144 = vector.shape_cast %143 : vector<1x4x32xf32> to vector<4x32xf32>
    %145 = vector.shape_cast %142 : vector<4x32xf32> to vector<1x4x32xf32>
    tpu.vector_store %arg9[%c3, %c0_30, %c0_31], %145 {strides = array<i32>} : memref<10x4x32xf32, #tpu.memory_space<vmem>>, vector<1x4x32xf32>,
    %146 = vector.extract_strided_slice %6 {offsets = [16, 0], sizes = [4, 128], strides = [1, 1]} : vector<40x128xf32> to vector<4x128xf32>
    %cst_32 = arith.constant dense<0.000000e+00> : vector<4x128xf32>
    %147 = tpu.matmul %135, %7, %cst_32 {dimension_numbers = #tpu.dot_dimension_numbers<[1], [0], [0], [1], [0, 0, 1, 1], [], []>} : vector<4x32xf32>, vector<32x128xf32>, vector<4x128xf32> -> vector<4x128xf32>
    %148 = arith.addf %146, %147 : vector<4x128xf32>
    %149 = vector.extract_strided_slice %148 {offsets = [0, 0], sizes = [4, 96], strides = [1, 1]} : vector<4x128xf32> to vector<4x96xf32>
    %150 = arith.negf %149 : vector<4x96xf32>
    %151 = math.exp %150 : vector<4x96xf32>
    %cst_33 = arith.constant 1.000000e+00 : f32
    %152 = vector.broadcast %cst_33 : f32 to vector<4x96xf32>
    %153 = arith.addf %152, %151 : vector<4x96xf32>
    %154 = arith.divf %152, %153 : vector<4x96xf32>
    %155 = vector.extract_strided_slice %148 {offsets = [0, 96], sizes = [4, 32], strides = [1, 1]} : vector<4x128xf32> to vector<4x32xf32>
    %156 = math.tanh %155 : vector<4x32xf32>
    %157 = vector.extract_strided_slice %154 {offsets = [0, 0], sizes = [4, 32], strides = [1, 1]} : vector<4x96xf32> to vector<4x32xf32>
    %158 = vector.extract_strided_slice %154 {offsets = [0, 32], sizes = [4, 32], strides = [1, 1]} : vector<4x96xf32> to vector<4x32xf32>
    %159 = vector.extract_strided_slice %154 {offsets = [0, 64], sizes = [4, 32], strides = [1, 1]} : vector<4x96xf32> to vector<4x32xf32>
    %160 = arith.mulf %158, %138 : vector<4x32xf32>
    %161 = arith.mulf %157, %156 : vector<4x32xf32>
    %162 = arith.addf %160, %161 : vector<4x32xf32>
    %163 = math.tanh %162 : vector<4x32xf32>
    %164 = arith.mulf %159, %163 : vector<4x32xf32>
    %c4_i32 = arith.constant 4 : i32
    %165 = vector.broadcast %c4_i32 : i32 to vector<4x1xi32>
    %166 = arith.cmpi sgt, %0, %165 : vector<4x1xi32>
    %167 = vector.shape_cast %166 : vector<4x1xi1> to vector<4x1xi1>
    %168 = vector.broadcast %167 : vector<4x1xi1> to vector<4x32xi1>
    %169 = arith.select %168, %164, %135 : vector<4x32xi1>, vector<4x32xf32>
    %170 = vector.shape_cast %166 : vector<4x1xi1> to vector<4x1xi1>
    %171 = vector.broadcast %170 : vector<4x1xi1> to vector<4x32xi1>
    %172 = arith.select %171, %162, %138 : vector<4x32xi1>, vector<4x32xf32>
    %cst_34 = arith.constant 0.000000e+00 : f32
    %173 = vector.shape_cast %166 : vector<4x1xi1> to vector<4x1xi1>
    %174 = vector.broadcast %173 : vector<4x1xi1> to vector<4x32xi1>
    %175 = vector.broadcast %cst_34 : f32 to vector<4x32xf32>
    %176 = arith.select %174, %164, %175 : vector<4x32xi1>, vector<4x32xf32>
    %c4 = arith.constant 4 : index
    %c0_35 = arith.constant 0 : index
    %c0_36 = arith.constant 0 : index
    %177 = vector.load %arg9[%c4, %c0_35, %c0_36] : memref<10x4x32xf32, #tpu.memory_space<vmem>>, vector<1x4x32xf32>
    %178 = vector.shape_cast %177 : vector<1x4x32xf32> to vector<4x32xf32>
    %179 = vector.shape_cast %176 : vector<4x32xf32> to vector<1x4x32xf32>
    tpu.vector_store %arg9[%c4, %c0_35, %c0_36], %179 {strides = array<i32>} : memref<10x4x32xf32, #tpu.memory_space<vmem>>, vector<1x4x32xf32>,
    %180 = vector.extract_strided_slice %6 {offsets = [20, 0], sizes = [4, 128], strides = [1, 1]} : vector<40x128xf32> to vector<4x128xf32>
    %cst_37 = arith.constant dense<0.000000e+00> : vector<4x128xf32>
    %181 = tpu.matmul %169, %7, %cst_37 {dimension_numbers = #tpu.dot_dimension_numbers<[1], [0], [0], [1], [0, 0, 1, 1], [], []>} : vector<4x32xf32>, vector<32x128xf32>, vector<4x128xf32> -> vector<4x128xf32>
    %182 = arith.addf %180, %181 : vector<4x128xf32>
    %183 = vector.extract_strided_slice %182 {offsets = [0, 0], sizes = [4, 96], strides = [1, 1]} : vector<4x128xf32> to vector<4x96xf32>
    %184 = arith.negf %183 : vector<4x96xf32>
    %185 = math.exp %184 : vector<4x96xf32>
    %cst_38 = arith.constant 1.000000e+00 : f32
    %186 = vector.broadcast %cst_38 : f32 to vector<4x96xf32>
    %187 = arith.addf %186, %185 : vector<4x96xf32>
    %188 = arith.divf %186, %187 : vector<4x96xf32>
    %189 = vector.extract_strided_slice %182 {offsets = [0, 96], sizes = [4, 32], strides = [1, 1]} : vector<4x128xf32> to vector<4x32xf32>
    %190 = math.tanh %189 : vector<4x32xf32>
    %191 = vector.extract_strided_slice %188 {offsets = [0, 0], sizes = [4, 32], strides = [1, 1]} : vector<4x96xf32> to vector<4x32xf32>
    %192 = vector.extract_strided_slice %188 {offsets = [0, 32], sizes = [4, 32], strides = [1, 1]} : vector<4x96xf32> to vector<4x32xf32>
    %193 = vector.extract_strided_slice %188 {offsets = [0, 64], sizes = [4, 32], strides = [1, 1]} : vector<4x96xf32> to vector<4x32xf32>
    %194 = arith.mulf %192, %172 : vector<4x32xf32>
    %195 = arith.mulf %191, %190 : vector<4x32xf32>
    %196 = arith.addf %194, %195 : vector<4x32xf32>
    %197 = math.tanh %196 : vector<4x32xf32>
    %198 = arith.mulf %193, %197 : vector<4x32xf32>
    %c5_i32 = arith.constant 5 : i32
    %199 = vector.broadcast %c5_i32 : i32 to vector<4x1xi32>
    %200 = arith.cmpi sgt, %0, %199 : vector<4x1xi32>
    %201 = vector.shape_cast %200 : vector<4x1xi1> to vector<4x1xi1>
    %202 = vector.broadcast %201 : vector<4x1xi1> to vector<4x32xi1>
    %203 = arith.select %202, %198, %169 : vector<4x32xi1>, vector<4x32xf32>
    %204 = vector.shape_cast %200 : vector<4x1xi1> to vector<4x1xi1>
    %205 = vector.broadcast %204 : vector<4x1xi1> to vector<4x32xi1>
    %206 = arith.select %205, %196, %172 : vector<4x32xi1>, vector<4x32xf32>
    %cst_39 = arith.constant 0.000000e+00 : f32
    %207 = vector.shape_cast %200 : vector<4x1xi1> to vector<4x1xi1>
    %208 = vector.broadcast %207 : vector<4x1xi1> to vector<4x32xi1>
    %209 = vector.broadcast %cst_39 : f32 to vector<4x32xf32>
    %210 = arith.select %208, %198, %209 : vector<4x32xi1>, vector<4x32xf32>
    %c5 = arith.constant 5 : index
    %c0_40 = arith.constant 0 : index
    %c0_41 = arith.constant 0 : index
    %211 = vector.load %arg9[%c5, %c0_40, %c0_41] : memref<10x4x32xf32, #tpu.memory_space<vmem>>, vector<1x4x32xf32>
    %212 = vector.shape_cast %211 : vector<1x4x32xf32> to vector<4x32xf32>
    %213 = vector.shape_cast %210 : vector<4x32xf32> to vector<1x4x32xf32>
    tpu.vector_store %arg9[%c5, %c0_40, %c0_41], %213 {strides = array<i32>} : memref<10x4x32xf32, #tpu.memory_space<vmem>>, vector<1x4x32xf32>,
    %214 = vector.extract_strided_slice %6 {offsets = [24, 0], sizes = [4, 128], strides = [1, 1]} : vector<40x128xf32> to vector<4x128xf32>
    %cst_42 = arith.constant dense<0.000000e+00> : vector<4x128xf32>
    %215 = tpu.matmul %203, %7, %cst_42 {dimension_numbers = #tpu.dot_dimension_numbers<[1], [0], [0], [1], [0, 0, 1, 1], [], []>} : vector<4x32xf32>, vector<32x128xf32>, vector<4x128xf32> -> vector<4x128xf32>
    %216 = arith.addf %214, %215 : vector<4x128xf32>
    %217 = vector.extract_strided_slice %216 {offsets = [0, 0], sizes = [4, 96], strides = [1, 1]} : vector<4x128xf32> to vector<4x96xf32>
    %218 = arith.negf %217 : vector<4x96xf32>
    %219 = math.exp %218 : vector<4x96xf32>
    %cst_43 = arith.constant 1.000000e+00 : f32
    %220 = vector.broadcast %cst_43 : f32 to vector<4x96xf32>
    %221 = arith.addf %220, %219 : vector<4x96xf32>
    %222 = arith.divf %220, %221 : vector<4x96xf32>
    %223 = vector.extract_strided_slice %216 {offsets = [0, 96], sizes = [4, 32], strides = [1, 1]} : vector<4x128xf32> to vector<4x32xf32>
    %224 = math.tanh %223 : vector<4x32xf32>
    %225 = vector.extract_strided_slice %222 {offsets = [0, 0], sizes = [4, 32], strides = [1, 1]} : vector<4x96xf32> to vector<4x32xf32>
    %226 = vector.extract_strided_slice %222 {offsets = [0, 32], sizes = [4, 32], strides = [1, 1]} : vector<4x96xf32> to vector<4x32xf32>
    %227 = vector.extract_strided_slice %222 {offsets = [0, 64], sizes = [4, 32], strides = [1, 1]} : vector<4x96xf32> to vector<4x32xf32>
    %228 = arith.mulf %226, %206 : vector<4x32xf32>
    %229 = arith.mulf %225, %224 : vector<4x32xf32>
    %230 = arith.addf %228, %229 : vector<4x32xf32>
    %231 = math.tanh %230 : vector<4x32xf32>
    %232 = arith.mulf %227, %231 : vector<4x32xf32>
    %c6_i32 = arith.constant 6 : i32
    %233 = vector.broadcast %c6_i32 : i32 to vector<4x1xi32>
    %234 = arith.cmpi sgt, %0, %233 : vector<4x1xi32>
    %235 = vector.shape_cast %234 : vector<4x1xi1> to vector<4x1xi1>
    %236 = vector.broadcast %235 : vector<4x1xi1> to vector<4x32xi1>
    %237 = arith.select %236, %232, %203 : vector<4x32xi1>, vector<4x32xf32>
    %238 = vector.shape_cast %234 : vector<4x1xi1> to vector<4x1xi1>
    %239 = vector.broadcast %238 : vector<4x1xi1> to vector<4x32xi1>
    %240 = arith.select %239, %230, %206 : vector<4x32xi1>, vector<4x32xf32>
    %cst_44 = arith.constant 0.000000e+00 : f32
    %241 = vector.shape_cast %234 : vector<4x1xi1> to vector<4x1xi1>
    %242 = vector.broadcast %241 : vector<4x1xi1> to vector<4x32xi1>
    %243 = vector.broadcast %cst_44 : f32 to vector<4x32xf32>
    %244 = arith.select %242, %232, %243 : vector<4x32xi1>, vector<4x32xf32>
    %c6 = arith.constant 6 : index
    %c0_45 = arith.constant 0 : index
    %c0_46 = arith.constant 0 : index
    %245 = vector.load %arg9[%c6, %c0_45, %c0_46] : memref<10x4x32xf32, #tpu.memory_space<vmem>>, vector<1x4x32xf32>
    %246 = vector.shape_cast %245 : vector<1x4x32xf32> to vector<4x32xf32>
    %247 = vector.shape_cast %244 : vector<4x32xf32> to vector<1x4x32xf32>
    tpu.vector_store %arg9[%c6, %c0_45, %c0_46], %247 {strides = array<i32>} : memref<10x4x32xf32, #tpu.memory_space<vmem>>, vector<1x4x32xf32>,
    %248 = vector.extract_strided_slice %6 {offsets = [28, 0], sizes = [4, 128], strides = [1, 1]} : vector<40x128xf32> to vector<4x128xf32>
    %cst_47 = arith.constant dense<0.000000e+00> : vector<4x128xf32>
    %249 = tpu.matmul %237, %7, %cst_47 {dimension_numbers = #tpu.dot_dimension_numbers<[1], [0], [0], [1], [0, 0, 1, 1], [], []>} : vector<4x32xf32>, vector<32x128xf32>, vector<4x128xf32> -> vector<4x128xf32>
    %250 = arith.addf %248, %249 : vector<4x128xf32>
    %251 = vector.extract_strided_slice %250 {offsets = [0, 0], sizes = [4, 96], strides = [1, 1]} : vector<4x128xf32> to vector<4x96xf32>
    %252 = arith.negf %251 : vector<4x96xf32>
    %253 = math.exp %252 : vector<4x96xf32>
    %cst_48 = arith.constant 1.000000e+00 : f32
    %254 = vector.broadcast %cst_48 : f32 to vector<4x96xf32>
    %255 = arith.addf %254, %253 : vector<4x96xf32>
    %256 = arith.divf %254, %255 : vector<4x96xf32>
    %257 = vector.extract_strided_slice %250 {offsets = [0, 96], sizes = [4, 32], strides = [1, 1]} : vector<4x128xf32> to vector<4x32xf32>
    %258 = math.tanh %257 : vector<4x32xf32>
    %259 = vector.extract_strided_slice %256 {offsets = [0, 0], sizes = [4, 32], strides = [1, 1]} : vector<4x96xf32> to vector<4x32xf32>
    %260 = vector.extract_strided_slice %256 {offsets = [0, 32], sizes = [4, 32], strides = [1, 1]} : vector<4x96xf32> to vector<4x32xf32>
    %261 = vector.extract_strided_slice %256 {offsets = [0, 64], sizes = [4, 32], strides = [1, 1]} : vector<4x96xf32> to vector<4x32xf32>
    %262 = arith.mulf %260, %240 : vector<4x32xf32>
    %263 = arith.mulf %259, %258 : vector<4x32xf32>
    %264 = arith.addf %262, %263 : vector<4x32xf32>
    %265 = math.tanh %264 : vector<4x32xf32>
    %266 = arith.mulf %261, %265 : vector<4x32xf32>
    %c7_i32 = arith.constant 7 : i32
    %267 = vector.broadcast %c7_i32 : i32 to vector<4x1xi32>
    %268 = arith.cmpi sgt, %0, %267 : vector<4x1xi32>
    %269 = vector.shape_cast %268 : vector<4x1xi1> to vector<4x1xi1>
    %270 = vector.broadcast %269 : vector<4x1xi1> to vector<4x32xi1>
    %271 = arith.select %270, %266, %237 : vector<4x32xi1>, vector<4x32xf32>
    %272 = vector.shape_cast %268 : vector<4x1xi1> to vector<4x1xi1>
    %273 = vector.broadcast %272 : vector<4x1xi1> to vector<4x32xi1>
    %274 = arith.select %273, %264, %240 : vector<4x32xi1>, vector<4x32xf32>
    %cst_49 = arith.constant 0.000000e+00 : f32
    %275 = vector.shape_cast %268 : vector<4x1xi1> to vector<4x1xi1>
    %276 = vector.broadcast %275 : vector<4x1xi1> to vector<4x32xi1>
    %277 = vector.broadcast %cst_49 : f32 to vector<4x32xf32>
    %278 = arith.select %276, %266, %277 : vector<4x32xi1>, vector<4x32xf32>
    %c7 = arith.constant 7 : index
    %c0_50 = arith.constant 0 : index
    %c0_51 = arith.constant 0 : index
    %279 = vector.load %arg9[%c7, %c0_50, %c0_51] : memref<10x4x32xf32, #tpu.memory_space<vmem>>, vector<1x4x32xf32>
    %280 = vector.shape_cast %279 : vector<1x4x32xf32> to vector<4x32xf32>
    %281 = vector.shape_cast %278 : vector<4x32xf32> to vector<1x4x32xf32>
    tpu.vector_store %arg9[%c7, %c0_50, %c0_51], %281 {strides = array<i32>} : memref<10x4x32xf32, #tpu.memory_space<vmem>>, vector<1x4x32xf32>,
    %282 = vector.extract_strided_slice %6 {offsets = [32, 0], sizes = [4, 128], strides = [1, 1]} : vector<40x128xf32> to vector<4x128xf32>
    %cst_52 = arith.constant dense<0.000000e+00> : vector<4x128xf32>
    %283 = tpu.matmul %271, %7, %cst_52 {dimension_numbers = #tpu.dot_dimension_numbers<[1], [0], [0], [1], [0, 0, 1, 1], [], []>} : vector<4x32xf32>, vector<32x128xf32>, vector<4x128xf32> -> vector<4x128xf32>
    %284 = arith.addf %282, %283 : vector<4x128xf32>
    %285 = vector.extract_strided_slice %284 {offsets = [0, 0], sizes = [4, 96], strides = [1, 1]} : vector<4x128xf32> to vector<4x96xf32>
    %286 = arith.negf %285 : vector<4x96xf32>
    %287 = math.exp %286 : vector<4x96xf32>
    %cst_53 = arith.constant 1.000000e+00 : f32
    %288 = vector.broadcast %cst_53 : f32 to vector<4x96xf32>
    %289 = arith.addf %288, %287 : vector<4x96xf32>
    %290 = arith.divf %288, %289 : vector<4x96xf32>
    %291 = vector.extract_strided_slice %284 {offsets = [0, 96], sizes = [4, 32], strides = [1, 1]} : vector<4x128xf32> to vector<4x32xf32>
    %292 = math.tanh %291 : vector<4x32xf32>
    %293 = vector.extract_strided_slice %290 {offsets = [0, 0], sizes = [4, 32], strides = [1, 1]} : vector<4x96xf32> to vector<4x32xf32>
    %294 = vector.extract_strided_slice %290 {offsets = [0, 32], sizes = [4, 32], strides = [1, 1]} : vector<4x96xf32> to vector<4x32xf32>
    %295 = vector.extract_strided_slice %290 {offsets = [0, 64], sizes = [4, 32], strides = [1, 1]} : vector<4x96xf32> to vector<4x32xf32>
    %296 = arith.mulf %294, %274 : vector<4x32xf32>
    %297 = arith.mulf %293, %292 : vector<4x32xf32>
    %298 = arith.addf %296, %297 : vector<4x32xf32>
    %299 = math.tanh %298 : vector<4x32xf32>
    %300 = arith.mulf %295, %299 : vector<4x32xf32>
    %c8_i32 = arith.constant 8 : i32
    %301 = vector.broadcast %c8_i32 : i32 to vector<4x1xi32>
    %302 = arith.cmpi sgt, %0, %301 : vector<4x1xi32>
    %303 = vector.shape_cast %302 : vector<4x1xi1> to vector<4x1xi1>
    %304 = vector.broadcast %303 : vector<4x1xi1> to vector<4x32xi1>
    %305 = arith.select %304, %300, %271 : vector<4x32xi1>, vector<4x32xf32>
    %306 = vector.shape_cast %302 : vector<4x1xi1> to vector<4x1xi1>
    %307 = vector.broadcast %306 : vector<4x1xi1> to vector<4x32xi1>
    %308 = arith.select %307, %298, %274 : vector<4x32xi1>, vector<4x32xf32>
    %cst_54 = arith.constant 0.000000e+00 : f32
    %309 = vector.shape_cast %302 : vector<4x1xi1> to vector<4x1xi1>
    %310 = vector.broadcast %309 : vector<4x1xi1> to vector<4x32xi1>
    %311 = vector.broadcast %cst_54 : f32 to vector<4x32xf32>
    %312 = arith.select %310, %300, %311 : vector<4x32xi1>, vector<4x32xf32>
    %c8 = arith.constant 8 : index
    %c0_55 = arith.constant 0 : index
    %c0_56 = arith.constant 0 : index
    %313 = vector.load %arg9[%c8, %c0_55, %c0_56] : memref<10x4x32xf32, #tpu.memory_space<vmem>>, vector<1x4x32xf32>
    %314 = vector.shape_cast %313 : vector<1x4x32xf32> to vector<4x32xf32>
    %315 = vector.shape_cast %312 : vector<4x32xf32> to vector<1x4x32xf32>
    tpu.vector_store %arg9[%c8, %c0_55, %c0_56], %315 {strides = array<i32>} : memref<10x4x32xf32, #tpu.memory_space<vmem>>, vector<1x4x32xf32>,
    %316 = vector.extract_strided_slice %6 {offsets = [36, 0], sizes = [4, 128], strides = [1, 1]} : vector<40x128xf32> to vector<4x128xf32>
    %cst_57 = arith.constant dense<0.000000e+00> : vector<4x128xf32>
    %317 = tpu.matmul %305, %7, %cst_57 {dimension_numbers = #tpu.dot_dimension_numbers<[1], [0], [0], [1], [0, 0, 1, 1], [], []>} : vector<4x32xf32>, vector<32x128xf32>, vector<4x128xf32> -> vector<4x128xf32>
    %318 = arith.addf %316, %317 : vector<4x128xf32>
    %319 = vector.extract_strided_slice %318 {offsets = [0, 0], sizes = [4, 96], strides = [1, 1]} : vector<4x128xf32> to vector<4x96xf32>
    %320 = arith.negf %319 : vector<4x96xf32>
    %321 = math.exp %320 : vector<4x96xf32>
    %cst_58 = arith.constant 1.000000e+00 : f32
    %322 = vector.broadcast %cst_58 : f32 to vector<4x96xf32>
    %323 = arith.addf %322, %321 : vector<4x96xf32>
    %324 = arith.divf %322, %323 : vector<4x96xf32>
    %325 = vector.extract_strided_slice %318 {offsets = [0, 96], sizes = [4, 32], strides = [1, 1]} : vector<4x128xf32> to vector<4x32xf32>
    %326 = math.tanh %325 : vector<4x32xf32>
    %327 = vector.extract_strided_slice %324 {offsets = [0, 0], sizes = [4, 32], strides = [1, 1]} : vector<4x96xf32> to vector<4x32xf32>
    %328 = vector.extract_strided_slice %324 {offsets = [0, 32], sizes = [4, 32], strides = [1, 1]} : vector<4x96xf32> to vector<4x32xf32>
    %329 = vector.extract_strided_slice %324 {offsets = [0, 64], sizes = [4, 32], strides = [1, 1]} : vector<4x96xf32> to vector<4x32xf32>
    %330 = arith.mulf %328, %308 : vector<4x32xf32>
    %331 = arith.mulf %327, %326 : vector<4x32xf32>
    %332 = arith.addf %330, %331 : vector<4x32xf32>
    %333 = math.tanh %332 : vector<4x32xf32>
    %334 = arith.mulf %329, %333 : vector<4x32xf32>
    %c9_i32 = arith.constant 9 : i32
    %335 = vector.broadcast %c9_i32 : i32 to vector<4x1xi32>
    %336 = arith.cmpi sgt, %0, %335 : vector<4x1xi32>
    %337 = vector.shape_cast %336 : vector<4x1xi1> to vector<4x1xi1>
    %338 = vector.broadcast %337 : vector<4x1xi1> to vector<4x32xi1>
    %339 = arith.select %338, %334, %305 : vector<4x32xi1>, vector<4x32xf32>
    %cst_59 = arith.constant 0.000000e+00 : f32
    %340 = vector.shape_cast %336 : vector<4x1xi1> to vector<4x1xi1>
    %341 = vector.broadcast %340 : vector<4x1xi1> to vector<4x32xi1>
    %342 = vector.broadcast %cst_59 : f32 to vector<4x32xf32>
    %343 = arith.select %341, %334, %342 : vector<4x32xi1>, vector<4x32xf32>
    %c9 = arith.constant 9 : index
    %c0_60 = arith.constant 0 : index
    %c0_61 = arith.constant 0 : index
    %344 = vector.load %arg9[%c9, %c0_60, %c0_61] : memref<10x4x32xf32, #tpu.memory_space<vmem>>, vector<1x4x32xf32>
    %345 = vector.shape_cast %344 : vector<1x4x32xf32> to vector<4x32xf32>
    %346 = vector.shape_cast %343 : vector<4x32xf32> to vector<1x4x32xf32>
    tpu.vector_store %arg9[%c9, %c0_60, %c0_61], %346 {strides = array<i32>} : memref<10x4x32xf32, #tpu.memory_space<vmem>>, vector<1x4x32xf32>,
    %c0_62 = arith.constant 0 : index
    %c0_63 = arith.constant 0 : index
    %c0_64 = arith.constant 0 : index
    %347 = vector.load %arg9[%c0_62, %c0_63, %c0_64] : memref<10x4x32xf32, #tpu.memory_space<vmem>>, vector<10x4x32xf32>
    %c0_65 = arith.constant 0 : index
    %c0_66 = arith.constant 0 : index
    %348 = vector.load %arg6[%c0_65, %c0_66] : memref<1x32xf32, #tpu.memory_space<vmem>>, vector<1x32xf32>
    %349 = vector.broadcast %348 : vector<1x32xf32> to vector<4x32xf32>
    %350 = arith.mulf %349, %339 : vector<4x32xf32>
    %351 = vector.shape_cast %350 : vector<4x32xf32> to vector<1x4x32xf32>
    %352 = vector.broadcast %351 : vector<1x4x32xf32> to vector<10x4x32xf32>
    %353 = arith.mulf %347, %352 : vector<10x4x32xf32>
    %cst_67 = arith.constant dense<0.000000e+00> : vector<10x4xf32>
    %354 = vector.multi_reduction <add>, %353, %cst_67 [2] : vector<10x4x32xf32> to vector<10x4xf32>
    %355 = tpu.iota {dimensions = array<i32: 0>} : vector<10x4xi32>
    %c0_68 = arith.constant 0 : index
    %c0_69 = arith.constant 0 : index
    %356 = vector.load %arg2[%c0_68, %c0_69] : memref<1x4xi32, #tpu.memory_space<vmem>>, vector<1x4xi32>
    %357 = vector.broadcast %356 : vector<1x4xi32> to vector<10x4xi32>
    %358 = arith.cmpi slt, %355, %357 : vector<10x4xi32>
    %cst_70 = arith.constant -1.000000e+09 : f32
    %359 = vector.broadcast %cst_70 : f32 to vector<10x4xf32>
    %360 = arith.select %358, %354, %359 : vector<10x4xi1>, vector<10x4xf32>
    %cst_71 = arith.constant dense<0xFF800000> : vector<4xf32>
    %361 = vector.multi_reduction <maximumf>, %360, %cst_71 [0] : vector<10x4xf32> to vector<4xf32>
    %362 = vector.shape_cast %361 : vector<4xf32> to vector<1x4xf32>
    %363 = vector.broadcast %362 : vector<1x4xf32> to vector<10x4xf32>
    %364 = arith.subf %360, %363 : vector<10x4xf32>
    %365 = math.exp %364 : vector<10x4xf32>
    %cst_72 = arith.constant dense<0.000000e+00> : vector<4xf32>
    %366 = vector.multi_reduction <add>, %365, %cst_72 [0] : vector<10x4xf32> to vector<4xf32>
    %367 = vector.shape_cast %366 : vector<4xf32> to vector<1x4xf32>
    %368 = vector.broadcast %367 : vector<1x4xf32> to vector<10x4xf32>
    %369 = arith.divf %365, %368 : vector<10x4xf32>
    %370 = vector.shape_cast %369 : vector<10x4xf32> to vector<10x4x1xf32>
    %371 = vector.broadcast %370 : vector<10x4x1xf32> to vector<10x4x32xf32>
    %372 = arith.mulf %347, %371 : vector<10x4x32xf32>
    %cst_73 = arith.constant dense<0.000000e+00> : vector<4x32xf32>
    %373 = vector.multi_reduction <add>, %372, %cst_73 [0] : vector<10x4x32xf32> to vector<4x32xf32>
    %c0_74 = arith.constant 0 : index
    %c0_75 = arith.constant 0 : index
    %374 = vector.load %arg7[%c0_74, %c0_75] : memref<4x32xf32, #tpu.memory_space<vmem>>, vector<4x32xf32>
    tpu.vector_store %arg7[%c0_74, %c0_75], %373 {strides = array<i32>} : memref<4x32xf32, #tpu.memory_space<vmem>>, vector<4x32xf32>,
    %375 = tpu.transpose %369, [1, 0] : vector<10x4xf32> -> vector<4x10xf32>
    %c0_76 = arith.constant 0 : index
    %c0_77 = arith.constant 0 : index
    %376 = vector.load %arg8[%c0_76, %c0_77] : memref<4x10xf32, #tpu.memory_space<vmem>>, vector<4x10xf32>
    tpu.vector_store %arg8[%c0_76, %c0_77], %375 {strides = array<i32>} : memref<4x10xf32, #tpu.memory_space<vmem>>, vector<4x10xf32>,
    return
  }
}

</mosaic_0001>

<bundles_post_ra>
// kernel: tpu_custom_call.1
= control target key start
LH: loop header
LB: loop body
LE: loop exit
PB: predicated region body
PF: predicated region fallthrough
CT: control target
= control target key end

     0   :  { %14 = vsyncpa [#allocation4], 0  ;;  %v2080_v2 = vmov 0.0   ;;  %s2561_s0 = inlined_call_operand.vmem [shape: f32[40,32], index: 0, kind: input, shape index: {}]   ;;  %s2562_s1 = inlined_call_operand.vmem [shape: s32[4,1], index: 1, kind: input, shape index: {}]   ;;  %s2563_s2 = inlined_call_operand.vmem [shape: s32[1,4], index: 2, kind: input, shape index: {}]   ;;  %s2564_s3 = inlined_call_operand.vmem [shape: f32[32,128], index: 3, kind: input, shape index: {}]   ;;  %s2565_s4 = inlined_call_operand.vmem [shape: f32[32,128], index: 4, kind: input, shape index: {}]   ;;  %s2566_s5 = inlined_call_operand.vmem [shape: f32[1,128], index: 5, kind: input, shape index: {}]   ;;  %s2567_s6 = inlined_call_operand.vmem [shape: f32[1,32], index: 6, kind: input, shape index: {}]   ;;  %s2568_s7 = inlined_call_operand.hbm [shape: f32[4,32], index: 7, kind: output, shape index: {0}]   ;;  %s2569_s8 = inlined_call_operand.hbm [shape: f32[4,10], index: 8, kind: output, shape index: {1}]  }
   0x1   :  { %v39_v0 = vld [vmem:[%s2564_s3 + $0x18] sm:$0xff]  ;;  %1807 = vmatprep.subr.mxu0 %v2080_v2  ;;  %1830 = vmatprep.subr.mxu1 %v2080_v2  ;;  %v38_v3 = vld [vmem:[%s2564_s3 + $0x10] sm:$0xff]  ;;  %v37_v5 = vld [vmem:[%s2564_s3 + $0x8] sm:$0xff] }
   0x2   :  { %v2139_v1 = vld [vmem:[%s2565_s4 + $0x18] sm:$0xff]  ;;  %v2149_v4 = vld [vmem:[%s2565_s4 + $0x10] sm:$0xff]  ;;  %1808 = vmatpush3.msra.mxu0 %v39_v0  ;;  %v2160_v6 = vld [vmem:[%s2565_s4 + $0x8] sm:$0xff] }
   0x3   :  { %1831 = vmatpush3.msra.mxu1 %v2139_v1  ;;  %1809 = vmatprep.subr.mxu0 %v2080_v2 }
   0x4   :  { %1832 = vmatprep.subr.mxu1 %v2080_v2 }
   0x5   :  { %15 = vsyncpa [#allocation6], 0  ;;  %1810 = vmatpush3.msra.mxu0 %v38_v3  ;;  %1833 = vmatpush3.msra.mxu1 %v2149_v4  ;;  %v36_v7 = vld [vmem:[%s2564_s3] sm:$0xff]  ;;  %vm47_vm0 = vcmask 261120   ;;  %vm2081_vm1 = vmmov 0   ;;  %v2082_v11 = vmov 0  }
   0x6   :  { %1811 = vmatprep.subr.mxu0 %v2080_v2  ;;  %1834 = vmatprep.subr.mxu1 %v2080_v2  ;;  %v2172_v8 = vld [vmem:[%s2565_s4] sm:$0xff]  ;;  %vm267_vm4 = vcmask 257024   ;;  %s2085_s25 = smov 96   ;;  %v32_v53 = vld [vmem:[%s2561_s0 + $0x8] sm:$0xff] }
   0x7   :  { %1812 = vmatpush3.msra.mxu0 %v37_v5  ;;  %1835 = vmatpush3.msra.mxu1 %v2160_v6  ;;  %v31_v9 = vld [vmem:[%s2561_s0] sm:$0xff] }
   0x8   :  { %1813 = vmatprep.subr.mxu0 %v2080_v2  ;;  %1836 = vmatprep.subr.mxu1 %v2080_v2  ;;  %v2211_v10 = vld [vmem:[%s2562_s1] sm:$0xf]  ;;  %s2083_s1 = smov 32  }
   0x9   :  { %1814 = vmatpush3.msra.mxu0 %v36_v7  ;;  %1815 = vmatprep.mubr.msk.f32.mxu0 %vm2081_vm1, %v2080_v2  ;;  %vm255_vm2 = vcmp.gt.s32.totalorder %v2211_v10, 0  ;;  %v2220_v13 = vld [vmem:[%s2566_s5] ss:$0 sm:$0xff]  ;;  %s2084_s5 = smov 64   ;;  %vm372_vm5 = vcmp.gt.s32.totalorder %v2211_v10, 1  ;;  %vm498_vm7 = vcmp.gt.s32.totalorder %v2211_v10, 2 }
   0xa   :  { %1837 = vmatpush3.msra.mxu1 %v2172_v8  ;;  %1838 = vmatprep.mubr.msk.f32.mxu1 %vm2081_vm1, %v2080_v2  ;;  %v256_v12 = vsel %vm255_vm2, 1, %v2082_v11  ;;  %v373_v47 = vsel %vm372_vm5, 1, %v2082_v11  ;;  %v499_v5 = vsel %vm498_vm7, 1, %v2082_v11  ;;  %vm622_vm9 = vcmp.gt.s32.totalorder %v2211_v10, 3 }
   0xb   :  { %1816 = vmatmul.mubr.msk.f32.vlgmr.msra.gmra.mxu0 %vm47_vm0, %v31_v9  ;;  %1839 = vmatmul.mubr.f32.vlgmr.msra.gmra.mxu1 %v2080_v2  ;;  %vm749_vm11 = vcmp.gt.s32.totalorder %v2211_v10, 4  ;;  %vm873_vm13 = vcmp.gt.s32.totalorder %v2211_v10, 5  ;;  %vm1000_vm15 = vcmp.gt.s32.totalorder %v2211_v10, 6  ;;  %vm1251_vm5 = vcmp.gt.s32.totalorder %v2211_v10, 8 }
   0xc   :  { %1841 = vmatprep.subr.mxu1 %v2080_v2  ;;  %1849 = vmatprep.mubr.msk.f32.mxu1 %vm2081_vm1, %v2080_v2  ;;  %vm1375_vm7 = vcmp.gt.s32.totalorder %v2211_v10, 9 }
   0xd   :  { %1842 = vmatpush3.msra.mxu1 %v2139_v1  ;;  %1818 = vmatprep.mubr.msk.f32.mxu0 %vm2081_vm1, %v2080_v2 }
   0xe   :  { %1843 = vmatprep.subr.mxu1 %v2080_v2  ;;  %1863 = vmatprep.subr.mxu0 %v2080_v2 }
   0xf   :  { %1844 = vmatpush3.msra.mxu1 %v2149_v4  ;;  %1864 = vmatpush3.msra.mxu0 %v2139_v1 }
  0x10   :  { %1845 = vmatprep.subr.mxu1 %v2080_v2  ;;  %1865 = vmatprep.subr.mxu0 %v2080_v2 }
  0x11   :  { %1846 = vmatpush3.msra.mxu1 %v2160_v6  ;;  %1866 = vmatpush3.msra.mxu0 %v2149_v4 }
  0x12   :  { %1847 = vmatprep.subr.mxu1 %v2080_v2  ;;  %1867 = vmatprep.subr.mxu0 %v2080_v2 }
  0x13   :  { %1848 = vmatpush3.msra.mxu1 %v2172_v8  ;;  %1868 = vmatpush3.msra.mxu0 %v2160_v6 }
  0x14   :  { %1852 = vmatprep.subr.mxu1 %v2080_v2  ;;  %1869 = vmatprep.subr.mxu0 %v2080_v2 }
  0x15   :  { %1870 = vmatpush3.msra.mxu0 %v2172_v8  ;;  %1948 = vset.pattern.permute.xlu1 %v2082_v11 }
  0x16   :  { %1885 = vmatprep.subr.mxu0 %v2080_v2  ;;  %1949 = vset.pattern.permute.xlu0 %v2082_v11 }
  0x17   :  { %258 = vperm.xlu1 %1948, %v256_v12   ;;  %1819 = vmatmul.mubr.msk.f32.gmra.mxu0 %vm47_vm0, %v32_v53 }
  0x18   :  { %1821 = vmatprep.mubr.msk.f32.mxu0 %vm2081_vm1, %v2080_v2 }
  0x92   :  { %v259_v31 = vpop.permute.xlu1 %258 }
  0x93   :  { %vm260_vm3 = vcmp.eq.s32.totalorder %v259_v31, 1 }
  0xcb   :  { %v129_v14 = vpop.f32.mrf.mxu0  ;;  %v226_v15 = vpop.f32.mrf.mxu1 }
  0xcc   :  { %v130_v16 = vadd.f32 %v2220_v13, %v129_v14 }
  0xcd   :  { %v1817_v17 = vpop.f32.mrf.mxu0  ;;  %v1840_v18 = vpop.f32.mrf.mxu1 }
  0xce   :  { %v230_v19 = vadd.f32 %v226_v15, %v130_v16 }
  0xd0   :  { %1950 = vtanh.f32 %v230_v19  ;;  %v1727_v21 = vmul.f32 -1.442695, %v230_v19 }
  0xd2   :  { %1952 = vpow2.f32 %v1727_v21 }
  0xd7   :  { %v134_v7 = vpop.f32.mrf.mxu0 }
  0xd8   :  { %v135_v12 = vadd.f32 %v2220_v13, %v134_v7 }
  0xd9   :  { %v1820_v9 = vpop.f32.mrf.mxu0 }
  0xdd   :  { %v1951_v20 = vpop.eup %1950 }
  0xde   :  { %240 = vrot.lane.b32.xlu0 %v1951_v20, %s2083_s1 }
  0xdf   :  { %v1953_v22 = vpop.eup %1952 }
  0xe0   :  { %v234_v23 = vadd.f32 1.0, %v1953_v22 }
  0xe2   :  { %1954 = vrcp.f32 %v234_v23 }
  0xef   :  { %v1955_v24 = vpop.eup %1954 }
  0xf0   :  { %v238_v27 = vmul.f32 0.0, %v1955_v24 }
 0x150   :  { %v241_v25 = vpop.permute.xlu0 %240 }
 0x151   :  { %v243_v26 = vmul.f32 %v1955_v24, %v241_v25 }
 0x153   :  { %245 = vrot.lane.b32.xlu0 %v243_v26, %s2083_s1 }
 0x1c5   :  { %v246_v28 = vpop.permute.xlu0 %245 }
 0x1c6   :  { %v248_v29 = vadd.f32 %v246_v28, %v238_v27  ;;  %v33_v28 = vld [vmem:[%s2561_s0 + $0x10] sm:$0xff] }
 0x1c7   :  { %1822 = vmatmul.mubr.msk.f32.gmra.mxu0 %vm47_vm0, %v33_v28 }
 0x1c8   :  { %1956 = vtanh.f32 %v248_v29  ;;  %v262_v48 = vsel %vm260_vm3, %v248_v29, 0.0  ;;  %1824 = vmatprep.mubr.msk.f32.mxu0 %vm2081_vm1, %v2080_v2  ;;  %v34_v29 = vld [vmem:[%s2561_s0 + $0x18] sm:$0xff] }
 0x1c9   :  { %v353_v49 = vrot.slane %v262_v48, 4 }
 0x1cb   :  { %1825 = vmatmul.mubr.msk.f32.gmra.mxu0 %vm47_vm0, %v34_v29 }
 0x1cc   :  { %1827 = vmatprep.mubr.msk.f32.mxu0 %vm2081_vm1, %v2080_v2 }
 0x1d5   :  { %v1957_v30 = vpop.eup %1956 }
 0x1d6   :  { %251 = vrot.lane.b32.xlu1 %v1957_v30, %s2083_s1  ;;  %v35_v30 = vld [vmem:[%s2561_s0 + $0x20] sm:$0xff] }
 0x1d7   :  { %1828 = vmatmul.mubr.msk.f32.gmra.mxu0 %vm47_vm0, %v35_v30 }
 0x1d8   :  { %1871 = vmatprep.mubr.msk.f32.mxu0 %vm2081_vm1, %v2080_v2 }
 0x248   :  { %v252_v32 = vpop.permute.xlu1 %251 }
 0x249   :  { %v254_v33 = vmul.f32 %v1955_v24, %v252_v32 }
 0x24b   :  { %v261_v34 = vsel %vm260_vm3, %v254_v33, 0.0 }
 0x24c   :  { %264 = vrot.lane.b32.xlu0 %v261_v34, %s2084_s5 }
 0x2be   :  { %v265_v35 = vpop.permute.xlu0 %264 }
 0x2bf   :  { %268 = vst.msk [vmem:[#allocation2] sm:$0xf] %vm267_vm4, %v265_v35  ;;  %1850 = vmatmul.mubr.msk.f32.vlgmr.msra.gmra.mxu1 %vm47_vm0, %v265_v35 }
 0x2c0   :  { %1853 = vmatpush3.msra.mxu1 %v2139_v1  ;;  %1860 = vmatprep.mubr.msk.f32.mxu1 %vm2081_vm1, %v2080_v2 }
 0x2c1   :  { %1854 = vmatprep.subr.mxu1 %v2080_v2 }
 0x2c2   :  { %1855 = vmatpush3.msra.mxu1 %v2149_v4 }
 0x2c3   :  { %1856 = vmatprep.subr.mxu1 %v2080_v2 }
 0x2c4   :  { %1857 = vmatpush3.msra.mxu1 %v2160_v6 }
 0x2c5   :  { %1858 = vmatprep.subr.mxu1 %v2080_v2 }
 0x2c6   :  { %1859 = vmatpush3.msra.mxu1 %v2172_v8 }
 0x2c7   :  { %1874 = vmatprep.subr.mxu1 %v2080_v2 }
 0x37f   :  { %v337_v36 = vpop.f32.mrf.mxu1 }
 0x380   :  { %v342_v37 = vrot.slane %v337_v36, 4 }
 0x381   :  { %v1851_v38 = vpop.f32.mrf.mxu1 }
 0x382   :  { %v344_v39 = vadd.f32 %v342_v37, %v130_v16  ;;  %v2302_v37 = vpop.f32.mrf.mxu0 }
 0x384   :  { %1958 = vtanh.f32 %v344_v39  ;;  %v1729_v41 = vmul.f32 -1.442695, %v344_v39  ;;  %v1823_v38 = vpop.f32.mrf.mxu0 }
 0x386   :  { %1960 = vpow2.f32 %v1729_v41  ;;  %v2304_v39 = vpop.f32.mrf.mxu0 }
 0x391   :  { %v1959_v40 = vpop.eup %1958 }
 0x392   :  { %357 = vrot.lane.b32.xlu1 %v1959_v40, %s2083_s1  ;;  %v1826_v40 = vpop.f32.mrf.mxu0 }
 0x393   :  { %v1961_v42 = vpop.eup %1960 }
 0x394   :  { %v348_v43 = vadd.f32 1.0, %v1961_v42  ;;  %v2306_v41 = vpop.f32.mrf.mxu0 }
 0x396   :  { %1962 = vrcp.f32 %v348_v43  ;;  %v1829_v42 = vpop.f32.mrf.mxu0 }
 0x3a3   :  { %v1963_v44 = vpop.eup %1962 }
 0x3a4   :  { %v355_v50 = vmul.f32 %v1963_v44, %v353_v49 }
 0x404   :  { %v358_v45 = vpop.permute.xlu1 %357 }
 0x405   :  { %v360_v46 = vmul.f32 %v1963_v44, %v358_v45 }
 0x407   :  { %362 = vrot.lane.b32.xlu0 %v360_v46, %s2083_s1 }
 0x40b   :  { %375 = vperm.xlu0 %1949, %v373_v47  }
 0x40f   :  { %389 = vrot.lane.b32.xlu0 %v262_v48, %s2085_s25 }
 0x479   :  { %v363_v51 = vpop.permute.xlu0 %362 }
 0x47a   :  { %v365_v52 = vadd.f32 %v363_v51, %v355_v50 }
 0x47c   :  { %1964 = vtanh.f32 %v365_v52  ;;  %v385_v58 = vrot.slane %v365_v52, 4 }
 0x486   :  { %v376_v59 = vpop.permute.xlu0 %375 }
 0x487   :  { %vm377_vm6 = vcmp.eq.s32.totalorder %v376_v59, 1 }
 0x489   :  { %v1965_v54 = vpop.eup %1964 }
 0x48a   :  { %368 = vrot.lane.b32.xlu1 %v1965_v54, %s2083_s1  ;;  %v390_v63 = vpop.permute.xlu0 %389 }
 0x4fc   :  { %v369_v55 = vpop.permute.xlu1 %368 }
 0x4fd   :  { %v371_v56 = vmul.f32 %v1963_v44, %v369_v55  ;;  %v623_v55 = vsel %vm622_vm9, 1, %v2082_v11  ;;  %vm1513_vm9 = vcmask 1042434  }
 0x4ff   :  { %v379_v57 = vrot.slane %v371_v56, 4 }
 0x501   :  { %380 = vrot.lane.b32.xlu1 %v379_v57, %s2084_s5 }
 0x505   :  { %386 = vrot.lane.b32.xlu1 %v385_v58, %s2085_s25 }
 0x573   :  { %v381_v60 = vpop.permute.xlu1 %380 }
 0x574   :  { %v383_v61 = vsel %vm377_vm6, %v381_v60, %v265_v35  ;;  %v393_v62 = vsel %vm377_vm6, %v381_v60, 0.0 }
 0x575   :  { %395 = vst.msk [vmem:[#allocation2 + $0x4] sm:$0xf] %vm267_vm4, %v393_v62  ;;  %1861 = vmatmul.mubr.msk.f32.vlgmr.msra.gmra.mxu1 %vm47_vm0, %v383_v61 }
 0x576   :  { %1875 = vmatpush3.msra.mxu1 %v2139_v1  ;;  %1882 = vmatprep.mubr.msk.f32.mxu1 %vm2081_vm1, %v2080_v2 }
 0x577   :  { %v387_v0 = vpop.permute.xlu1 %386  ;;  %1876 = vmatprep.subr.mxu1 %v2080_v2 }
 0x578   :  { %v392_v3 = vsel %vm377_vm6, %v387_v0, %v390_v63  ;;  %1877 = vmatpush3.msra.mxu1 %v2149_v4 }
 0x579   :  { %478 = vrot.lane.b32.xlu0 %v392_v3, %s2083_s1  ;;  %1878 = vmatprep.subr.mxu1 %v2080_v2 }
 0x57a   :  { %1879 = vmatpush3.msra.mxu1 %v2160_v6 }
 0x57b   :  { %1880 = vmatprep.subr.mxu1 %v2080_v2 }
 0x57c   :  { %1881 = vmatpush3.msra.mxu1 %v2172_v8 }
 0x57d   :  { %501 = vperm.xlu0 %1949, %v499_v5   ;;  %1896 = vmatprep.subr.mxu1 %v2080_v2 }
 0x581   :  { %504 = vrot.lane.b32.xlu0 %v383_v61, %s2084_s5 }
 0x5eb   :  { %v479_v24 = vpop.permute.xlu0 %478 }
 0x5f8   :  { %v2293_v32 = vpop.permute.xlu0 %501 }
 0x5f9   :  { %vm503_vm8 = vcmp.eq.s32.totalorder %v2293_v32, 1 }
 0x5fc   :  { %v505_v35 = vpop.permute.xlu0 %504 }
 0x635   :  { %v465_v14 = vpop.f32.mrf.mxu1 }
 0x636   :  { %v469_v15 = vadd.f32 %v465_v14, %v135_v12 }
 0x637   :  { %v1862_v16 = vpop.f32.mrf.mxu1 }
 0x638   :  { %1966 = vtanh.f32 %v469_v15  ;;  %v1731_v18 = vmul.f32 -1.442695, %v469_v15 }
 0x63a   :  { %1968 = vpow2.f32 %v1731_v18  ;;  %v140_v18 = vadd.f32 %v2220_v13, %v2302_v37 }
 0x645   :  { %v1967_v17 = vpop.eup %1966 }
 0x646   :  { %483 = vrot.lane.b32.xlu1 %v1967_v17, %s2083_s1  ;;  %v750_v17 = vsel %vm749_vm11, 1, %v2082_v11  ;;  %vm1517_vm11 = vcmask 1044484  }
 0x647   :  { %v1969_v19 = vpop.eup %1968 }
 0x648   :  { %v473_v20 = vadd.f32 1.0, %v1969_v19 }
 0x64a   :  { %1970 = vrcp.f32 %v473_v20 }
 0x657   :  { %v1971_v21 = vpop.eup %1970 }
 0x658   :  { %v481_v25 = vmul.f32 %v1971_v21, %v479_v24 }
 0x6b8   :  { %v484_v22 = vpop.permute.xlu1 %483 }
 0x6b9   :  { %v486_v23 = vmul.f32 %v1971_v21, %v484_v22 }
 0x6bb   :  { %488 = vrot.lane.b32.xlu1 %v486_v23, %s2083_s1 }
 0x72d   :  { %v489_v26 = vpop.permute.xlu1 %488 }
 0x72e   :  { %v491_v27 = vadd.f32 %v489_v26, %v481_v25 }
 0x730   :  { %1972 = vtanh.f32 %v491_v27  ;;  %v508_v56 = vsel %vm503_vm8, %v491_v27, %v479_v24 }
 0x731   :  { %v603_v57 = vrot.slane %v508_v56, 4 }
 0x73d   :  { %v1973_v31 = vpop.eup %1972 }
 0x73e   :  { %494 = vrot.lane.b32.xlu1 %v1973_v31, %s2083_s1 }
 0x7b0   :  { %v495_v33 = vpop.permute.xlu1 %494 }
 0x7b1   :  { %v2295_v34 = vmul.f32 %v1971_v21, %v495_v33 }
 0x7b3   :  { %v507_v36 = vsel %vm503_vm8, %v2295_v34, %v505_v35 }
 0x7b4   :  { %517 = vrot.lane.b32.xlu1 %v507_v36, %s2084_s5 }
 0x826   :  { %v518_v43 = vpop.permute.xlu1 %517 }
 0x827   :  { %1872 = vmatmul.mubr.msk.f32.vlgmr.msra.gmra.mxu0 %vm47_vm0, %v518_v43 }
 0x828   :  { %1886 = vmatpush3.msra.mxu0 %v2139_v1  ;;  %1893 = vmatprep.mubr.msk.f32.mxu0 %vm2081_vm1, %v2080_v2 }
 0x829   :  { %1887 = vmatprep.subr.mxu0 %v2080_v2 }
 0x82a   :  { %1888 = vmatpush3.msra.mxu0 %v2149_v4 }
 0x82b   :  { %1889 = vmatprep.subr.mxu0 %v2080_v2 }
 0x82c   :  { %1890 = vmatpush3.msra.mxu0 %v2160_v6 }
 0x82d   :  { %1891 = vmatprep.subr.mxu0 %v2080_v2 }
 0x82e   :  { %1892 = vmatpush3.msra.mxu0 %v2172_v8 }
 0x82f   :  { %1907 = vmatprep.subr.mxu0 %v2080_v2 }
 0x8e7   :  { %v587_v44 = vpop.f32.mrf.mxu0 }
 0x8e8   :  { %v592_v45 = vrot.slane %v587_v44, 4 }
 0x8e9   :  { %v1873_v46 = vpop.f32.mrf.mxu0 }
 0x8ea   :  { %v594_v47 = vadd.f32 %v592_v45, %v135_v12 }
 0x8ec   :  { %1974 = vtanh.f32 %v594_v47  ;;  %v1733_v49 = vmul.f32 -1.442695, %v594_v47 }
 0x8ee   :  { %1976 = vpow2.f32 %v1733_v49 }
 0x8f9   :  { %v1975_v48 = vpop.eup %1974 }
 0x8fa   :  { %607 = vrot.lane.b32.xlu0 %v1975_v48, %s2083_s1 }
 0x8fb   :  { %v1977_v50 = vpop.eup %1976 }
 0x8fc   :  { %v598_v51 = vadd.f32 1.0, %v1977_v50 }
 0x8fe   :  { %1978 = vrcp.f32 %v598_v51 }
 0x90b   :  { %v1979_v52 = vpop.eup %1978 }
 0x90c   :  { %v605_v58 = vmul.f32 %v1979_v52, %v603_v57 }
 0x96c   :  { %v608_v53 = vpop.permute.xlu0 %607 }
 0x96d   :  { %v610_v54 = vmul.f32 %v1979_v52, %v608_v53 }
 0x96f   :  { %612 = vrot.lane.b32.xlu1 %v610_v54, %s2083_s1 }
 0x973   :  { %625 = vperm.xlu1 %1948, %v623_v55   ;;  %v874_v55 = vsel %vm873_vm13, 1, %v2082_v11  ;;  %vm1521_vm13 = vcmask 1046534  }
 0x9e1   :  { %v613_v59 = vpop.permute.xlu1 %612 }
 0x9e2   :  { %v615_v60 = vadd.f32 %v613_v59, %v605_v58 }
 0x9e4   :  { %1980 = vtanh.f32 %v615_v60  ;;  %v636_v61 = vrot.slane %v615_v60, 4 }
 0x9e6   :  { %637 = vrot.lane.b32.xlu1 %v636_v61, %s2085_s25 }
 0x9ee   :  { %v626_v5 = vpop.permute.xlu1 %625 }
 0x9ef   :  { %vm627_vm10 = vcmp.eq.s32.totalorder %v626_v5, 1 }
 0x9f1   :  { %v1981_v62 = vpop.eup %1980 }
 0x9f2   :  { %618 = vrot.lane.b32.xlu0 %v1981_v62, %s2083_s1 }
 0xa58   :  { %v638_v14 = vpop.permute.xlu1 %637 }
 0xa64   :  { %v619_v63 = vpop.permute.xlu0 %618 }
 0xa65   :  { %v621_v0 = vmul.f32 %v1979_v52, %v619_v63 }
 0xa67   :  { %v629_v3 = vrot.slane %v621_v0, 4 }
 0xa69   :  { %630 = vrot.lane.b32.xlu0 %v629_v3, %s2084_s5 }
 0xa6d   :  { %640 = vrot.lane.b32.xlu0 %v508_v56, %s2085_s25 }
 0xadb   :  { %v631_v7 = vpop.permute.xlu0 %630 }
 0xadc   :  { %v634_v9 = vsel %vm627_vm10, %v631_v7, %v518_v43  ;;  %v644_v12 = vsel %vm627_vm10, %v631_v7, 0.0 }
 0xadd   :  { %646 = vst.msk [vmem:[#allocation2 + $0xc] sm:$0xf] %vm267_vm4, %v644_v12  ;;  %1883 = vmatmul.mubr.msk.f32.vlgmr.msra.gmra.mxu1 %vm47_vm0, %v634_v9 }
 0xade   :  { %1897 = vmatpush3.msra.mxu1 %v2139_v1  ;;  %1904 = vmatprep.mubr.msk.f32.mxu1 %vm2081_vm1, %v2080_v2 }
 0xadf   :  { %v641_v15 = vpop.permute.xlu0 %640  ;;  %1898 = vmatprep.subr.mxu1 %v2080_v2 }
 0xae0   :  { %v643_v16 = vsel %vm627_vm10, %v638_v14, %v641_v15  ;;  %1899 = vmatpush3.msra.mxu1 %v2149_v4  ;;  %vm1515_vm10 = vcmask 1043459  }
 0xae1   :  { %729 = vrot.lane.b32.xlu0 %v643_v16, %s2083_s1  ;;  %1900 = vmatprep.subr.mxu1 %v2080_v2 }
 0xae2   :  { %1901 = vmatpush3.msra.mxu1 %v2160_v6 }
 0xae3   :  { %1902 = vmatprep.subr.mxu1 %v2080_v2 }
 0xae4   :  { %1903 = vmatpush3.msra.mxu1 %v2172_v8 }
 0xae5   :  { %752 = vperm.xlu0 %1949, %v750_v17   ;;  %1918 = vmatprep.subr.mxu1 %v2080_v2  ;;  %v1001_v17 = vsel %vm1000_vm15, 1, %v2082_v11 }
 0xae9   :  { %755 = vrot.lane.b32.xlu0 %v634_v9, %s2084_s5 }
 0xb53   :  { %v730_v29 = vpop.permute.xlu0 %729 }
 0xb60   :  { %v2350_v36 = vpop.permute.xlu0 %752 }
 0xb61   :  { %vm754_vm12 = vcmp.eq.s32.totalorder %v2350_v36, 1 }
 0xb64   :  { %v756_v40 = vpop.permute.xlu0 %755 }
 0xb9d   :  { %v716_v19 = vpop.f32.mrf.mxu1 }
 0xb9e   :  { %v720_v20 = vadd.f32 %v716_v19, %v140_v18 }
 0xb9f   :  { %v1884_v21 = vpop.f32.mrf.mxu1 }
 0xba0   :  { %1982 = vtanh.f32 %v720_v20  ;;  %v1735_v23 = vmul.f32 -1.442695, %v720_v20 }
 0xba2   :  { %1984 = vpow2.f32 %v1735_v23 }
 0xbad   :  { %v1983_v22 = vpop.eup %1982 }
 0xbae   :  { %734 = vrot.lane.b32.xlu1 %v1983_v22, %s2083_s1 }
 0xbaf   :  { %v1985_v24 = vpop.eup %1984 }
 0xbb0   :  { %v724_v25 = vadd.f32 1.0, %v1985_v24 }
 0xbb2   :  { %1986 = vrcp.f32 %v724_v25 }
 0xbbf   :  { %v1987_v26 = vpop.eup %1986 }
 0xbc0   :  { %v732_v30 = vmul.f32 %v1987_v26, %v730_v29 }
 0xc20   :  { %v735_v27 = vpop.permute.xlu1 %734 }
 0xc21   :  { %v737_v28 = vmul.f32 %v1987_v26, %v735_v27 }
 0xc23   :  { %739 = vrot.lane.b32.xlu1 %v737_v28, %s2083_s1 }
 0xc95   :  { %v740_v31 = vpop.permute.xlu1 %739 }
 0xc96   :  { %v742_v33 = vadd.f32 %v740_v31, %v732_v30 }
 0xc98   :  { %1988 = vtanh.f32 %v742_v33  ;;  %v759_v56 = vsel %vm754_vm12, %v742_v33, %v730_v29 }
 0xc99   :  { %v854_v57 = vrot.slane %v759_v56, 4 }
 0xca5   :  { %v1989_v35 = vpop.eup %1988 }
 0xca6   :  { %745 = vrot.lane.b32.xlu1 %v1989_v35, %s2083_s1 }
 0xd18   :  { %v746_v37 = vpop.permute.xlu1 %745 }
 0xd19   :  { %v2352_v38 = vmul.f32 %v1987_v26, %v746_v37 }
 0xd1b   :  { %v758_v42 = vsel %vm754_vm12, %v2352_v38, %v756_v40 }
 0xd1c   :  { %768 = vrot.lane.b32.xlu1 %v758_v42, %s2084_s5 }
 0xd8e   :  { %v769_v43 = vpop.permute.xlu1 %768 }
 0xd8f   :  { %1894 = vmatmul.mubr.msk.f32.vlgmr.msra.gmra.mxu0 %vm47_vm0, %v769_v43 }
 0xd90   :  { %1908 = vmatpush3.msra.mxu0 %v2139_v1  ;;  %1915 = vmatprep.mubr.msk.f32.mxu0 %vm2081_vm1, %v2080_v2 }
 0xd91   :  { %1909 = vmatprep.subr.mxu0 %v2080_v2 }
 0xd92   :  { %1910 = vmatpush3.msra.mxu0 %v2149_v4 }
 0xd93   :  { %1911 = vmatprep.subr.mxu0 %v2080_v2 }
 0xd94   :  { %1912 = vmatpush3.msra.mxu0 %v2160_v6 }
 0xd95   :  { %1913 = vmatprep.subr.mxu0 %v2080_v2 }
 0xd96   :  { %1914 = vmatpush3.msra.mxu0 %v2172_v8 }
 0xd97   :  { %1929 = vmatprep.subr.mxu0 %v2080_v2 }
 0xe4f   :  { %v838_v44 = vpop.f32.mrf.mxu0 }
 0xe50   :  { %v843_v45 = vrot.slane %v838_v44, 4 }
 0xe51   :  { %v1895_v46 = vpop.f32.mrf.mxu0 }
 0xe52   :  { %v845_v47 = vadd.f32 %v843_v45, %v140_v18  ;;  %v145_v18 = vadd.f32 %v2220_v13, %v2304_v39 }
 0xe54   :  { %1990 = vtanh.f32 %v845_v47  ;;  %v1737_v49 = vmul.f32 -1.442695, %v845_v47 }
 0xe56   :  { %1992 = vpow2.f32 %v1737_v49 }
 0xe61   :  { %v1991_v48 = vpop.eup %1990 }
 0xe62   :  { %858 = vrot.lane.b32.xlu0 %v1991_v48, %s2083_s1 }
 0xe63   :  { %v1993_v50 = vpop.eup %1992 }
 0xe64   :  { %v849_v51 = vadd.f32 1.0, %v1993_v50 }
 0xe66   :  { %1994 = vrcp.f32 %v849_v51 }
 0xe73   :  { %v1995_v52 = vpop.eup %1994 }
 0xe74   :  { %v856_v58 = vmul.f32 %v1995_v52, %v854_v57 }
 0xed4   :  { %v859_v53 = vpop.permute.xlu0 %858 }
 0xed5   :  { %v861_v54 = vmul.f32 %v1995_v52, %v859_v53 }
 0xed7   :  { %863 = vrot.lane.b32.xlu1 %v861_v54, %s2083_s1 }
 0xedb   :  { %876 = vperm.xlu1 %1948, %v874_v55  }
 0xf49   :  { %v864_v59 = vpop.permute.xlu1 %863 }
 0xf4a   :  { %v866_v60 = vadd.f32 %v864_v59, %v856_v58 }
 0xf4c   :  { %1996 = vtanh.f32 %v866_v60  ;;  %v887_v61 = vrot.slane %v866_v60, 4 }
 0xf4e   :  { %888 = vrot.lane.b32.xlu1 %v887_v61, %s2085_s25 }
 0xf56   :  { %v877_v5 = vpop.permute.xlu1 %876 }
 0xf57   :  { %vm878_vm14 = vcmp.eq.s32.totalorder %v877_v5, 1 }
 0xf59   :  { %v1997_v62 = vpop.eup %1996 }
 0xf5a   :  { %869 = vrot.lane.b32.xlu0 %v1997_v62, %s2083_s1 }
 0xfc0   :  { %v889_v14 = vpop.permute.xlu1 %888 }
 0xfcc   :  { %v870_v63 = vpop.permute.xlu0 %869 }
 0xfcd   :  { %v872_v0 = vmul.f32 %v1995_v52, %v870_v63 }
 0xfcf   :  { %v880_v3 = vrot.slane %v872_v0, 4 }
 0xfd1   :  { %881 = vrot.lane.b32.xlu0 %v880_v3, %s2084_s5 }
 0xfd5   :  { %891 = vrot.lane.b32.xlu0 %v759_v56, %s2085_s25 }
0x1043   :  { %v882_v7 = vpop.permute.xlu0 %881 }
0x1044   :  { %v885_v9 = vsel %vm878_vm14, %v882_v7, %v769_v43  ;;  %v895_v12 = vsel %vm878_vm14, %v882_v7, 0.0 }
0x1045   :  { %897 = vst.msk [vmem:[#allocation2 + $0x14] sm:$0xf] %vm267_vm4, %v895_v12  ;;  %1905 = vmatmul.mubr.msk.f32.vlgmr.msra.gmra.mxu1 %vm47_vm0, %v885_v9  ;;  %v1252_v12 = vsel %vm1251_vm5, 1, %v2082_v11 }
0x1046   :  { %1919 = vmatpush3.msra.mxu1 %v2139_v1  ;;  %1926 = vmatprep.mubr.msk.f32.mxu1 %vm2081_vm1, %v2080_v2 }
0x1047   :  { %v892_v15 = vpop.permute.xlu0 %891  ;;  %1920 = vmatprep.subr.mxu1 %v2080_v2 }
0x1048   :  { %v894_v16 = vsel %vm878_vm14, %v889_v14, %v892_v15  ;;  %1921 = vmatpush3.msra.mxu1 %v2149_v4  ;;  %v150_v14 = vadd.f32 %v2220_v13, %v2306_v41  ;;  %vm1523_vm14 = vcmask 1047559  }
0x1049   :  { %980 = vrot.lane.b32.xlu0 %v894_v16, %s2083_s1  ;;  %1922 = vmatprep.subr.mxu1 %v2080_v2 }
0x104a   :  { %1923 = vmatpush3.msra.mxu1 %v2160_v6 }
0x104b   :  { %1924 = vmatprep.subr.mxu1 %v2080_v2 }
0x104c   :  { %1925 = vmatpush3.msra.mxu1 %v2172_v8 }
0x104d   :  { %1003 = vperm.xlu0 %1949, %v1001_v17  }
0x1051   :  { %1006 = vrot.lane.b32.xlu0 %v885_v9, %s2084_s5 }
0x10bb   :  { %v981_v29 = vpop.permute.xlu0 %980 }
0x10c8   :  { %v2400_v35 = vpop.permute.xlu0 %1003 }
0x10c9   :  { %vm1005_vm2 = vcmp.eq.s32.totalorder %v2400_v35, 1  ;;  %v1746_v35 = vld [vmem:[%s2567_s6] ss:$0 sm:$0xff] }
0x10cc   :  { %v1007_v42 = vpop.permute.xlu0 %1006 }
0x1105   :  { %v967_v19 = vpop.f32.mrf.mxu1 }
0x1106   :  { %v971_v20 = vadd.f32 %v967_v19, %v145_v18 }
0x1107   :  { %v1906_v21 = vpop.f32.mrf.mxu1 }
0x1108   :  { %1998 = vtanh.f32 %v971_v20  ;;  %v1739_v23 = vmul.f32 -1.442695, %v971_v20 }
0x110a   :  { %2000 = vpow2.f32 %v1739_v23 }
0x1115   :  { %v1999_v22 = vpop.eup %1998 }
0x1116   :  { %985 = vrot.lane.b32.xlu1 %v1999_v22, %s2083_s1 }
0x1117   :  { %v2001_v24 = vpop.eup %2000 }
0x1118   :  { %v975_v25 = vadd.f32 1.0, %v2001_v24 }
0x111a   :  { %2002 = vrcp.f32 %v975_v25 }
0x1127   :  { %v2003_v26 = vpop.eup %2002 }
0x1128   :  { %v983_v30 = vmul.f32 %v2003_v26, %v981_v29 }
0x1188   :  { %v986_v27 = vpop.permute.xlu1 %985 }
0x1189   :  { %v988_v28 = vmul.f32 %v2003_v26, %v986_v27 }
0x118b   :  { %990 = vrot.lane.b32.xlu1 %v988_v28, %s2083_s1 }
0x11fd   :  { %v991_v39 = vpop.permute.xlu1 %990 }
0x11fe   :  { %v993_v31 = vadd.f32 %v991_v39, %v983_v30 }
0x1200   :  { %2004 = vtanh.f32 %v993_v31 }
0x120d   :  { %v2005_v33 = vpop.eup %2004 }
0x120e   :  { %996 = vrot.lane.b32.xlu1 %v2005_v33, %s2083_s1 }
0x1280   :  { %v997_v37 = vpop.permute.xlu1 %996 }
0x1281   :  { %v2402_v40 = vmul.f32 %v2003_v26, %v997_v37 }
0x1283   :  { %v1009_v43 = vsel %vm1005_vm2, %v2402_v40, %v1007_v42  ;;  %v1011_v36 = vsel %vm1005_vm2, %v2402_v40, 0.0 }
0x1284   :  { %1019 = vrot.lane.b32.xlu1 %v1009_v43, %s2084_s5 }
0x12f6   :  { %v1020_v44 = vpop.permute.xlu1 %1019 }
0x12f7   :  { %1916 = vmatmul.mubr.msk.f32.vlgmr.msra.gmra.mxu0 %vm47_vm0, %v1020_v44 }
0x12f8   :  { %1930 = vmatpush3.msra.mxu0 %v2139_v1  ;;  %1937 = vmatprep.mubr.msk.f32.mxu0 %vm2081_vm1, %v2080_v2  ;;  %vm1124_vm1 = vcmp.gt.s32.totalorder %v2211_v10, 7 }
0x12f9   :  { %1931 = vmatprep.subr.mxu0 %v2080_v2 }
0x12fa   :  { %1932 = vmatpush3.msra.mxu0 %v2149_v4 }
0x12fb   :  { %1933 = vmatprep.subr.mxu0 %v2080_v2 }
0x12fc   :  { %1934 = vmatpush3.msra.mxu0 %v2160_v6 }
0x12fd   :  { %1935 = vmatprep.subr.mxu0 %v2080_v2  ;;  %v1125_v2 = vsel %vm1124_vm1, 1, %v2082_v11  ;;  %vm1530_vm1 = vcmask 31744  }
0x12fe   :  { %1936 = vmatpush3.msra.mxu0 %v2172_v8  ;;  %v1010_v8 = vsel %vm1005_vm2, %v993_v31, %v981_v29 }
0x12ff   :  { %v1105_v53 = vrot.slane %v1010_v8, 4 }
0x13b7   :  { %v1089_v45 = vpop.f32.mrf.mxu0 }
0x13b8   :  { %v1094_v46 = vrot.slane %v1089_v45, 4 }
0x13b9   :  { %v1917_v47 = vpop.f32.mrf.mxu0 }
0x13ba   :  { %v1096_v48 = vadd.f32 %v1094_v46, %v145_v18 }
0x13bc   :  { %2006 = vtanh.f32 %v1096_v48  ;;  %v1741_v49 = vmul.f32 -1.442695, %v1096_v48 }
0x13be   :  { %2008 = vpow2.f32 %v1741_v49 }
0x13c9   :  { %v2007_v1 = vpop.eup %2006 }
0x13ca   :  { %1109 = vrot.lane.b32.xlu0 %v2007_v1, %s2083_s1 }
0x13cb   :  { %v2009_v50 = vpop.eup %2008 }
0x13cc   :  { %v1100_v4 = vadd.f32 1.0, %v2009_v50 }
0x13ce   :  { %2010 = vrcp.f32 %v1100_v4  ;;  %v1376_v4 = vsel %vm1375_vm7, 1, %v2082_v11  ;;  %v509_v11 = vsel %vm503_vm8, %v2295_v34, 0.0  ;;  %vm1511_vm8 = vcmask 1041409  }
0x13db   :  { %v2011_v51 = vpop.eup %2010 }
0x13dc   :  { %v1107_v54 = vmul.f32 %v2011_v51, %v1105_v53 }
0x143c   :  { %v1110_v52 = vpop.permute.xlu0 %1109 }
0x143d   :  { %v1112_v6 = vmul.f32 %v2011_v51, %v1110_v52 }
0x143f   :  { %1114 = vrot.lane.b32.xlu1 %v1112_v6, %s2083_s1 }
0x1443   :  { %1127 = vperm.xlu1 %1948, %v1125_v2  }
0x14b1   :  { %v1115_v55 = vpop.permute.xlu1 %1114 }
0x14b2   :  { %v1117_v56 = vadd.f32 %v1115_v55, %v1107_v54 }
0x14b4   :  { %2012 = vtanh.f32 %v1117_v56  ;;  %v1138_v57 = vrot.slane %v1117_v56, 4 }
0x14b6   :  { %1139 = vrot.lane.b32.xlu1 %v1138_v57, %s2085_s25 }
0x14be   :  { %v1128_v62 = vpop.permute.xlu1 %1127 }
0x14bf   :  { %vm1129_vm3 = vcmp.eq.s32.totalorder %v1128_v62, 1 }
0x14c1   :  { %v2013_v58 = vpop.eup %2012 }
0x14c2   :  { %1120 = vrot.lane.b32.xlu0 %v2013_v58, %s2083_s1 }
0x1528   :  { %v1140_v5 = vpop.permute.xlu1 %1139 }
0x1534   :  { %v1121_v59 = vpop.permute.xlu0 %1120 }
0x1535   :  { %v1123_v60 = vmul.f32 %v2011_v51, %v1121_v59  ;;  %v760_v51 = vsel %vm754_vm12, %v2352_v38, 0.0  ;;  %vm1519_vm12 = vcmask 1045509  }
0x1537   :  { %v1131_v61 = vrot.slane %v1123_v60, 4 }
0x1539   :  { %1132 = vrot.lane.b32.xlu0 %v1131_v61, %s2084_s5 }
0x153d   :  { %1142 = vrot.lane.b32.xlu0 %v1010_v8, %s2085_s25 }
0x15ab   :  { %v1133_v63 = vpop.permute.xlu0 %1132 }
0x15ac   :  { %v1136_v0 = vsel %vm1129_vm3, %v1133_v63, %v1020_v44  ;;  %v1146_v3 = vsel %vm1129_vm3, %v1133_v63, 0.0  ;;  %v2472_v63 = vld [vmem:[#allocation2 + $0x4] sm:$0xf] }
0x15ad   :  { %1148 = vst.msk [vmem:[#allocation2 + $0x1c] sm:$0xf] %vm267_vm4, %v1146_v3  ;;  %1927 = vmatmul.mubr.msk.f32.vlgmr.msra.gmra.mxu1 %vm47_vm0, %v1136_v0 }
0x15af   :  { %v1143_v7 = vpop.permute.xlu0 %1142 }
0x15b0   :  { %v1145_v9 = vsel %vm1129_vm3, %v1140_v5, %v1143_v7  ;;  %vm1532_vm3 = vcmask 25600  }
0x15b1   :  { %1231 = vrot.lane.b32.xlu0 %v1145_v9, %s2083_s1  ;;  %v2480_v9 = vld [vmem:[#allocation2 + $0xc] sm:$0xf] }
0x15b5   :  { %1254 = vperm.xlu0 %1949, %v1252_v12  }
0x15b9   :  { %1257 = vrot.lane.b32.xlu0 %v1136_v0, %s2084_s5  ;;  %v2474_v0 = vld [vmem:[#allocation2] sm:$0xf] }
0x1623   :  { %v1232_v25 = vpop.permute.xlu0 %1231 }
0x1630   :  { %v1255_v28 = vpop.permute.xlu0 %1254 }
0x1631   :  { %vm1256_vm6 = vcmp.eq.s32.totalorder %v1255_v28, 1 }
0x1634   :  { %v1258_v39 = vpop.permute.xlu0 %1257 }
0x166d   :  { %v1218_v15 = vpop.f32.mrf.mxu1 }
0x166e   :  { %v1222_v16 = vadd.f32 %v1218_v15, %v150_v14 }
0x166f   :  { %v1928_v17 = vpop.f32.mrf.mxu1 }
0x1670   :  { %2014 = vtanh.f32 %v1222_v16  ;;  %v1743_v19 = vmul.f32 -1.442695, %v1222_v16 }
0x1672   :  { %2016 = vpow2.f32 %v1743_v19 }
0x167d   :  { %v2015_v18 = vpop.eup %2014 }
0x167e   :  { %1236 = vrot.lane.b32.xlu1 %v2015_v18, %s2083_s1  ;;  %v2488_v18 = vld [vmem:[#allocation2 + $0x14] sm:$0xf] }
0x167f   :  { %v2017_v20 = vpop.eup %2016 }
0x1680   :  { %v1226_v21 = vadd.f32 1.0, %v2017_v20 }
0x1682   :  { %2018 = vrcp.f32 %v1226_v21 }
0x168f   :  { %v2019_v22 = vpop.eup %2018 }
0x1690   :  { %v1234_v26 = vmul.f32 %v2019_v22, %v1232_v25 }
0x16f0   :  { %v1237_v23 = vpop.permute.xlu1 %1236 }
0x16f1   :  { %v1239_v24 = vmul.f32 %v2019_v22, %v1237_v23 }
0x16f3   :  { %1241 = vrot.lane.b32.xlu1 %v1239_v24, %s2083_s1  ;;  %v2496_v24 = vld [vmem:[#allocation2 + $0x1c] sm:$0xf] }
0x1765   :  { %v1242_v13 = vpop.permute.xlu1 %1241 }
0x1766   :  { %v1244_v41 = vadd.f32 %v1242_v13, %v1234_v26 }
0x1768   :  { %2020 = vtanh.f32 %v1244_v41  ;;  %v1261_v52 = vsel %vm1256_vm6, %v1244_v41, %v1232_v25 }
0x1769   :  { %v1356_v6 = vrot.slane %v1261_v52, 4 }
0x1775   :  { %v2021_v27 = vpop.eup %2020 }
0x1776   :  { %1247 = vrot.lane.b32.xlu1 %v2021_v27, %s2083_s1 }
0x17e8   :  { %v1248_v29 = vpop.permute.xlu1 %1247 }
0x17e9   :  { %v1250_v30 = vmul.f32 %v2019_v22, %v1248_v29 }
0x17eb   :  { %v1260_v31 = vsel %vm1256_vm6, %v1250_v30, %v1258_v39  ;;  %v1262_v38 = vsel %vm1256_vm6, %v1250_v30, 0.0 }
0x17ec   :  { %1270 = vrot.lane.b32.xlu1 %v1260_v31, %s2084_s5 }
0x185e   :  { %v1271_v33 = vpop.permute.xlu1 %1270 }
0x185f   :  { %1938 = vmatmul.mubr.msk.f32.vlgmr.msra.gmra.mxu0 %vm47_vm0, %v1271_v33 }
0x191f   :  { %v1340_v37 = vpop.f32.mrf.mxu0 }
0x1920   :  { %v1345_v42 = vrot.slane %v1340_v37, 4 }
0x1921   :  { %v1939_v43 = vpop.f32.mrf.mxu0 }
0x1922   :  { %v1347_v44 = vadd.f32 %v1345_v42, %v150_v14  ;;  %v1449_v42 = vlaneseq }
0x1924   :  { %2022 = vtanh.f32 %v1347_v44  ;;  %v1745_v46 = vmul.f32 -1.442695, %v1347_v44  ;;  %v2512_v43 = vshrl.u32 %v1449_v42, 7  ;;  %v1470_v44 = vand.u32 127, %v1449_v42 }
0x1926   :  { %2024 = vpow2.f32 %v1745_v46 }
0x1931   :  { %v2023_v45 = vpop.eup %2022 }
0x1932   :  { %1360 = vrot.lane.b32.xlu0 %v2023_v45, %s2083_s1  ;;  %v1473_v45 = vsub.s32 %v1470_v44, %v2512_v43 }
0x1933   :  { %v2025_v47 = vpop.eup %2024 }
0x1934   :  { %v1351_v48 = vadd.f32 1.0, %v2025_v47 }
0x1936   :  { %2026 = vrcp.f32 %v1351_v48 }
0x1943   :  { %v2027_v1 = vpop.eup %2026 }
0x1944   :  { %v1358_v2 = vmul.f32 %v2027_v1, %v1356_v6 }
0x19a4   :  { %v1361_v49 = vpop.permute.xlu0 %1360 }
0x19a5   :  { %v1363_v50 = vmul.f32 %v2027_v1, %v1361_v49 }
0x19a7   :  { %1365 = vrot.lane.b32.xlu1 %v1363_v50, %s2083_s1 }
0x19ab   :  { %1378 = vperm.xlu1 %1948, %v1376_v4  }
0x19af   :  { %762 = vrot.lane.b32.xlu1 %v760_v51, %s2084_s5 }
0x1a19   :  { %v1366_v8 = vpop.permute.xlu1 %1365 }
0x1a1a   :  { %v1368_v53 = vadd.f32 %v1366_v8, %v1358_v2 }
0x1a1c   :  { %2028 = vtanh.f32 %v1368_v53 }
0x1a26   :  { %v1379_v54 = vpop.permute.xlu1 %1378 }
0x1a27   :  { %vm1380_vm0 = vcmp.eq.s32.totalorder %v1379_v54, 1 }
0x1a29   :  { %v2029_v10 = vpop.eup %2028 }
0x1a2a   :  { %v763_v55 = vpop.permute.xlu1 %762  ;;  %1371 = vrot.lane.b32.xlu0 %v2029_v10, %s2083_s1 }
0x1a2b   :  { %766 = vst.msk [vmem:[#allocation2 + $0x10] sm:$0xf] %vm267_vm4, %v763_v55 }
0x1a2e   :  { %511 = vrot.lane.b32.xlu0 %v509_v11, %s2084_s5 }
0x1a32   :  { %1013 = vrot.lane.b32.xlu0 %v1011_v36, %s2084_s5  ;;  %v2486_v17 = vld [vmem:[#allocation2 + $0x10] sm:$0xf]  ;;  %v1747_v36 = vld [vmem:[%s2563_s2] ss:$0 sm:$0xff]  ;;  %s2086_s2 = smov [#allocation3]  }
0x1a33   :  { %vm1457_vm15 = vcmp.lt.s32.totalorder %v2512_v43, %v1747_v36  ;;  %s1699_s14 = sshll.u32 %s2086_s2, 4  ;;  %s1700_s14 = int_to_ptr.vmem [resolvable:$true] %s1699_s14 }
0x1a34   :  { %s2036_s15 = scalar_lea.vmem %s1700_s14, 64  ;;  %p2041_p1 = scmp.lt.s32.totalorder %s1700_s14, %s1700_s14 }
0x1a35   :  { %p2037_p0 = scmp.ne.s32.totalorder %s1700_s14, %s2036_s15  ;;  %p2042_p2 = scmp.lt.s32.totalorder %s2036_s15, %s2036_s15 }
0x1a36   :  { %1264 = vrot.lane.b32.xlu0 %v1262_v38, %s2084_s5 }
0x1a37   :  { %p2043_p3 = por %p2042_p2, %p2041_p1 }
0x1a39   :  { %p2044_p4 = pnand %p2043_p3, %p2037_p0 }
0x1a9c   :  { %v1372_v56 = vpop.permute.xlu0 %1371 }
0x1a9d   :  { %v1374_v57 = vmul.f32 %v2027_v1, %v1372_v56 }
0x1a9f   :  { %v1382_v58 = vrot.slane %v1374_v57, 4 }
0x1aa0   :  { %v512_v59 = vpop.permute.xlu0 %511 }
0x1aa1   :  { %515 = vst.msk [vmem:[#allocation2 + $0x8] sm:$0xf] %vm267_vm4, %v512_v59  ;;  %1383 = vrot.lane.b32.xlu1 %v1382_v58, %s2084_s5  ;;  %v1451_v58 = vadd.s32 8, %v2512_v43 }
0x1aa3   :  { %vm1458_vm2 = vcmp.lt.s32.totalorder %v1451_v58, %v1747_v36  ;;  %v1603_v36 = vsub.s32 6, %v2512_v43 }
0x1aa4   :  { %v1014_v32 = vpop.permute.xlu0 %1013 }
0x1aa5   :  { %1017 = vst.msk [vmem:[#allocation2 + $0x18] sm:$0xf] %vm267_vm4, %v1014_v32 }
0x1aa8   :  { %v1265_v34 = vpop.permute.xlu0 %1264  ;;  %v2478_v7 = vld [vmem:[#allocation2 + $0x8] sm:$0xf] }
0x1aa9   :  { %1268 = vst.msk [vmem:[#allocation2 + $0x20] sm:$0xf] %vm267_vm4, %v1265_v34 }
0x1aac   :  { %v2494_v23 = vld [vmem:[#allocation2 + $0x18] sm:$0xf] }
0x1ab0   :  { %v2504_v28 = vld [vmem:[#allocation2 + $0x20] sm:$0xf] }
0x1b13   :  { %v1384_v40 = vpop.permute.xlu1 %1383 }
0x1b14   :  { %v1387_v60 = vsel %vm1380_vm0, %v1384_v40, %v1271_v33  ;;  %v1388_v61 = vsel %vm1380_vm0, %v1384_v40, 0.0 }
0x1b15   :  { %1390 = vst.msk [vmem:[#allocation2 + $0x24] sm:$0xf] %vm267_vm4, %v1388_v61  ;;  %v1408_v62 = vmul.f32 %v1746_v35, %v1387_v60 }
0x1b17   :  { %v1410_v3 = vmul.f32 %v1408_v62, %v2472_v63  ;;  %v1409_v5 = vmul.f32 %v1408_v62, %v2474_v0  ;;  %v1411_v15 = vmul.f32 %v1408_v62, %v2478_v7  ;;  %v1412_v16 = vmul.f32 %v1408_v62, %v2480_v9 }
0x1b18   :  { %v1413_v21 = vmul.f32 %v1408_v62, %v2486_v17  ;;  %v1414_v22 = vmul.f32 %v1408_v62, %v2488_v18  ;;  %v1415_v13 = vmul.f32 %v1408_v62, %v2494_v23  ;;  %v1416_v41 = vmul.f32 %v1408_v62, %v2496_v24 }
0x1b19   :  { %v1422_v12 = vsel %vm267_vm4, %v1410_v3, 0.0  ;;  %v1419_v14 = vsel %vm267_vm4, %v1409_v5, 0.0  ;;  %v1425_v19 = vsel %vm267_vm4, %v1411_v15, 0.0  ;;  %v1428_v20 = vsel %vm267_vm4, %v1412_v16, 0.0 }
0x1b1a   :  { %1423 = vadd.xlane.f32.xlu0 %v1422_v12  ;;  %1420 = vadd.xlane.f32.xlu1 %v1419_v14  ;;  %v1431_v25 = vsel %vm267_vm4, %v1413_v21, 0.0  ;;  %v1434_v26 = vsel %vm267_vm4, %v1414_v22, 0.0  ;;  %v1437_v29 = vsel %vm267_vm4, %v1415_v13, 0.0  ;;  %v1440_v30 = vsel %vm267_vm4, %v1416_v41, 0.0 }
0x1b1b   :  { %v1417_v39 = vmul.f32 %v1408_v62, %v2504_v28 }
0x1b1c   :  { %v2502_v27 = vld [vmem:[#allocation2 + $0x24] sm:$0xf] }
0x1b1d   :  { %v1418_v31 = vmul.f32 %v1408_v62, %v2502_v27  ;;  %v1443_v33 = vsel %vm267_vm4, %v1417_v39, 0.0 }
0x1b1e   :  { %1426 = vadd.xlane.f32.xlu0 %v1425_v19  ;;  %1429 = vadd.xlane.f32.xlu1 %v1428_v20 }
0x1b1f   :  { %v1446_v37 = vsel %vm267_vm4, %v1418_v31, 0.0 }
0x1b22   :  { %1432 = vadd.xlane.f32.xlu0 %v1431_v25  ;;  %1435 = vadd.xlane.f32.xlu1 %v1434_v26 }
0x1b26   :  { %1438 = vadd.xlane.f32.xlu0 %v1437_v29  ;;  %1441 = vadd.xlane.f32.xlu1 %v1440_v30 }
0x1b2a   :  { %1444 = vadd.xlane.f32.xlu0 %v1443_v33  ;;  %1447 = vadd.xlane.f32.xlu1 %v1446_v37 }
0x1ba3   :  { %v1424_v46 = vpop.xlane.xlu0 %1423  ;;  %v1421_v47 = vpop.xlane.xlu1 %1420 }
0x1ba4   :  { %v1478_v48 = vrot.slane %v1424_v46, %v1473_v45  ;;  %v1474_v1 = vrot.slane %v1421_v47, %v1473_v45 }
0x1ba6   :  { %v1512_v51 = vsel %vm1511_vm8, %v1478_v48, %v1474_v1  ;;  %v1568_v1 = vsub.s32 1, %v2512_v43 }
0x1ba7   :  { %v1427_v49 = vpop.xlane.xlu0 %1426  ;;  %v1430_v50 = vpop.xlane.xlu1 %1429 }
0x1ba8   :  { %v1482_v4 = vrot.slane %v1427_v49, %v1473_v45  ;;  %v1486_v52 = vrot.slane %v1430_v50, %v1473_v45  ;;  %v1561_v49 = vsub.s32 0, %v2512_v43 }
0x1baa   :  { %v1514_v6 = vsel %vm1513_vm9, %v1482_v4, %v1512_v51 }
0x1bab   :  { %v1433_v2 = vpop.xlane.xlu0 %1432  ;;  %v1436_v8 = vpop.xlane.xlu1 %1435  ;;  %v1516_v54 = vsel %vm1515_vm10, %v1486_v52, %v1514_v6  ;;  %v1575_v6 = vsub.s32 2, %v2512_v43 }
0x1bac   :  { %v1490_v53 = vrot.slane %v1433_v2, %v1473_v45  ;;  %v1494_v10 = vrot.slane %v1436_v8, %v1473_v45  ;;  %v1582_v2 = vsub.s32 3, %v2512_v43 }
0x1bae   :  { %v1518_v55 = vsel %vm1517_vm11, %v1490_v53, %v1516_v54  ;;  %v1589_v54 = vsub.s32 4, %v2512_v43 }
0x1baf   :  { %v1439_v11 = vpop.xlane.xlu0 %1438  ;;  %v1442_v38 = vpop.xlane.xlu1 %1441  ;;  %v1520_v59 = vsel %vm1519_vm12, %v1494_v10, %v1518_v55  ;;  %v1596_v10 = vsub.s32 5, %v2512_v43 }
0x1bb0   :  { %v1498_v56 = vrot.slane %v1439_v11, %v1473_v45  ;;  %v1502_v57 = vrot.slane %v1442_v38, %v1473_v45  ;;  %v1610_v38 = vsub.s32 7, %v2512_v43 }
0x1bb2   :  { %v1522_v32 = vsel %vm1521_vm13, %v1498_v56, %v1520_v59 }
0x1bb3   :  { %v1524_v34 = vsel %vm1523_vm14, %v1502_v57, %v1522_v32  ;;  %v1445_v35 = vpop.xlane.xlu0 %1444  ;;  %v1448_v40 = vpop.xlane.xlu1 %1447 }
0x1bb4   :  { %v1506_v60 = vrot.slane %v1445_v35, %v1473_v45  ;;  %v1510_v61 = vrot.slane %v1448_v40, %v1473_v45  ;;  %v1528_v62 = vsel %vm1457_vm15, %v1524_v34, -1e+09 }
0x1bb5   :  { %v1531_v12 = vsel %vm1530_vm1, %v1528_v62, -inf }
0x1bb6   :  { %v1525_v3 = vsel %vm1511_vm8, %v1510_v61, %v1506_v60 }
0x1bb7   :  { %v1529_v5 = vsel %vm1458_vm2, %v1525_v3, -1e+09 }
0x1bb8   :  { %v1533_v14 = vsel %vm1532_vm3, %v1529_v5, -inf }
0x1bb9   :  { %v1534_v15 = vmax.f32 %v1531_v12, %v1533_v14 }
0x1bbb   :  { %v1535_v16 = vrot.slane %v1534_v15, 4 }
0x1bbd   :  { %v1536_v19 = vmax.f32 %v1534_v15, %v1535_v16 }
0x1bbf   :  { %v1537_v20 = vrot.slane %v1536_v19, 2 }
0x1bc1   :  { %v1538_v21 = vmax.f32 %v1536_v19, %v1537_v20 }
0x1bc3   :  { %v1539_v22 = vrot.slane %v1538_v21, 1 }
0x1bc5   :  { %v1540_v25 = vmax.f32 %v1538_v21, %v1539_v22 }
0x1bc7   :  { %v1541_v26 = vsub.f32 %v1528_v62, %v1540_v25  ;;  %v1542_v13 = vsub.f32 %v1529_v5, %v1540_v25 }
0x1bc9   :  { %v1543_v41 = vmul.f32 1.442695, %v1541_v26  ;;  %v1545_v29 = vmul.f32 1.442695, %v1542_v13 }
0x1bcb   :  { %2030 = vpow2.f32 %v1543_v41 }
0x1bcc   :  { %2032 = vpow2.f32 %v1545_v29 }
0x1bd8   :  { %v2031_v30 = vpop.eup %2030 }
0x1bd9   :  { %v2033_v39 = vpop.eup %2032  ;;  %v1547_v31 = vsel %vm1530_vm1, %v2031_v30, 0.0 }
0x1bda   :  { %v1548_v33 = vsel %vm1532_vm3, %v2033_v39, 0.0 }
0x1bdb   :  { %v1549_v37 = vadd.f32 %v1548_v33, %v1547_v31 }
0x1bdd   :  { %v1550_v42 = vrot.slane %v1549_v37, 4 }
0x1bdf   :  { %v1551_v44 = vadd.f32 %v1550_v42, %v1549_v37 }
0x1be1   :  { %v1552_v45 = vrot.slane %v1551_v44, 2 }
0x1be3   :  { %v1553_v46 = vadd.f32 %v1552_v45, %v1551_v44 }
0x1be5   :  { %v1554_v47 = vrot.slane %v1553_v46, 1 }
0x1be7   :  { %v1555_v48 = vadd.f32 %v1554_v47, %v1553_v46 }
0x1be9   :  { %2034 = vrcp.f32 %v1555_v48 }
0x1bf6   :  { %v2035_v50 = vpop.eup %2034 }
0x1bf7   :  { %v1557_v4 = vmul.f32 %v2035_v50, %v2031_v30  ;;  %v1558_v58 = vmul.f32 %v2035_v50, %v2033_v39 }
0x1bf9   :  { %v1569_v51 = vrot.slane %v1557_v4, %v1568_v1  ;;  %v1562_v52 = vrot.slane %v1557_v4, %v1561_v49  ;;  %v1576_v8 = vrot.slane %v1557_v4, %v1575_v6  ;;  %v1583_v53 = vrot.slane %v1557_v4, %v1582_v2 }
0x1bfa   :  { %v1590_v55 = vrot.slane %v1557_v4, %v1589_v54  ;;  %v1597_v11 = vrot.slane %v1557_v4, %v1596_v10  ;;  %v1604_v56 = vrot.slane %v1557_v4, %v1603_v36  ;;  %v1611_v57 = vrot.slane %v1557_v4, %v1610_v38 }
0x1bfb   :  { %1571 = vbcast.lane.b32.xlu1 %v1569_v51, 256  ;;  %1564 = vbcast.lane.b32.xlu0 %v1562_v52, 256  ;;  %v1618_v59 = vrot.slane %v1558_v58, %v1561_v49  ;;  %v1625_v32 = vrot.slane %v1558_v58, %v1568_v1 }
0x1bff   :  { %1578 = vbcast.lane.b32.xlu1 %v1576_v8, 256  ;;  %1585 = vbcast.lane.b32.xlu0 %v1583_v53, 256 }
0x1c03   :  { %1592 = vbcast.lane.b32.xlu1 %v1590_v55, 256  ;;  %1599 = vbcast.lane.b32.xlu0 %v1597_v11, 256 }
0x1c07   :  { %1606 = vbcast.lane.b32.xlu1 %v1604_v56, 256  ;;  %1613 = vbcast.lane.b32.xlu0 %v1611_v57, 256 }
0x1c0b   :  { %1620 = vbcast.lane.b32.xlu1 %v1618_v59, 256  ;;  %1627 = vbcast.lane.b32.xlu0 %v1625_v32, 256 }
0x1c34   :  { %1659 = vxpose.xlu1.b32.start [1/2] (short) (narrow) %v1557_v4, 8 }
0x1c38   :  { %1660 = vxpose.xlu1.b32.end [2/2] (short) (narrow) %v1558_v58, 8 }
0x1c6d   :  { %v1572_v34 = vpop.permute.xlu1 %1571  ;;  %v1565_v35 = vpop.permute.xlu0 %1564 }
0x1c6e   :  { %v1630_v40 = vmul.f32 %v1572_v34, %v2472_v63  ;;  %v1629_v60 = vmul.f32 %v1565_v35, %v2474_v0 }
0x1c70   :  { %v1640_v43 = vsel %vm267_vm4, %v1630_v40, 0.0  ;;  %v1639_v61 = vsel %vm267_vm4, %v1629_v60, 0.0 }
0x1c71   :  { %v1579_v62 = vpop.permute.xlu1 %1578  ;;  %v1586_v3 = vpop.permute.xlu0 %1585  ;;  %v1641_v14 = vadd.f32 %v1640_v43, %v1639_v61 }
0x1c72   :  { %v1631_v5 = vmul.f32 %v1579_v62, %v2478_v7  ;;  %v1632_v12 = vmul.f32 %v1586_v3, %v2480_v9 }
0x1c74   :  { %v1642_v15 = vsel %vm267_vm4, %v1631_v5, 0.0  ;;  %v1644_v63 = vsel %vm267_vm4, %v1632_v12, 0.0 }
0x1c75   :  { %v1643_v16 = vadd.f32 %v1642_v15, %v1641_v14  ;;  %v1593_v19 = vpop.permute.xlu1 %1592  ;;  %v1600_v20 = vpop.permute.xlu0 %1599 }
0x1c76   :  { %v1633_v0 = vmul.f32 %v1593_v19, %v2486_v17  ;;  %v1634_v21 = vmul.f32 %v1600_v20, %v2488_v18 }
0x1c77   :  { %v1645_v22 = vadd.f32 %v1644_v63, %v1643_v16 }
0x1c78   :  { %v1646_v25 = vsel %vm267_vm4, %v1633_v0, 0.0  ;;  %v1648_v9 = vsel %vm267_vm4, %v1634_v21, 0.0 }
0x1c79   :  { %v1647_v26 = vadd.f32 %v1646_v25, %v1645_v22  ;;  %v1607_v13 = vpop.permute.xlu1 %1606  ;;  %v1614_v7 = vpop.permute.xlu0 %1613 }
0x1c7a   :  { %v1635_v41 = vmul.f32 %v1607_v13, %v2494_v23  ;;  %v1636_v29 = vmul.f32 %v1614_v7, %v2496_v24 }
0x1c7b   :  { %v1649_v30 = vadd.f32 %v1648_v9, %v1647_v26 }
0x1c7c   :  { %v1650_v39 = vsel %vm267_vm4, %v1635_v41, 0.0  ;;  %v1652_v18 = vsel %vm267_vm4, %v1636_v29, 0.0 }
0x1c7d   :  { %v1651_v31 = vadd.f32 %v1650_v39, %v1649_v30  ;;  %v1621_v33 = vpop.permute.xlu1 %1620  ;;  %v1628_v17 = vpop.permute.xlu0 %1627 }
0x1c7e   :  { %v1637_v37 = vmul.f32 %v1621_v33, %v2504_v28  ;;  %v1638_v42 = vmul.f32 %v1628_v17, %v2502_v27 }
0x1c7f   :  { %v1653_v44 = vadd.f32 %v1652_v18, %v1651_v31 }
0x1c80   :  { %v1654_v45 = vsel %vm267_vm4, %v1637_v37, 0.0  ;;  %v1656_v24 = vsel %vm267_vm4, %v1638_v42, 0.0 }
0x1c81   :  { %v1655_v23 = vadd.f32 %v1654_v45, %v1653_v44 }
0x1c83   :  { %v1657_v46 = vadd.f32 %v1656_v24, %v1655_v23 }
0x1c85   :  { %1658 = vst.msk [vmem:[#allocation3] sm:$0xf] %vm267_vm4, %v1657_v46 }
0x1c86   :  { %2047 = shalt.err (!%p2044_p4)
}
0x1c87   :  { %1702 = dma.vmem_to_hbm [thread:$0]  %s1700_s14, 64, %s2568_s7, [#allocation4]   ;;  %vm1691_vm5 = vcmask 76800  }
0x1c88   :  { %s2087_s18 = smov [#allocation5]  }
0x1c89   :  { %s1709_s19 = sshll.u32 %s2087_s18, 4  ;;  %s1710_s19 = int_to_ptr.vmem [resolvable:$true] %s1709_s19 }
0x1c8a   :  { %s2056_s20 = scalar_lea.vmem %s1710_s19, 64  ;;  %p2061_p6 = scmp.lt.s32.totalorder %s1710_s19, %s1710_s19 }
0x1c8b   :  { %p2057_p5 = scmp.ne.s32.totalorder %s1710_s19, %s2056_s20  ;;  %p2062_p7 = scmp.lt.s32.totalorder %s2056_s20, %s2056_s20 }
0x1c8d   :  { %p2063_p8 = por %p2062_p7, %p2061_p6 }
0x1c8f   :  { %p2064_p9 = pnand %p2063_p8, %p2057_p5 }
0x1cb0   :  { %v1675_v27 = vpop.trf.xlu1 }
0x1cb1   :  { %1692 = vst.msk [vmem:[#allocation5] sm:$0xf] %vm1691_vm5, %v1675_v27 }
0x1cb2   :  { %2067 = shalt.err (!%p2064_p9)
}
0x1cb3   :  { %1712 = dma.vmem_to_hbm [thread:$0]  %s1710_s19, 64, %s2569_s8, [#allocation6]  }
0x1cb4   :  { %2076 = dma.done.wait [#allocation4], 64  }
0x1cb5   :  { %2077 = vsyncadd [#allocation4], 4294967232 }
0x1cb6   :  { %2078 = dma.done.wait [#allocation6], 64  }
0x1cb7   :  { %2079 = vsyncadd [#allocation6], 4294967232 }
0x1cb8   :  { %1719 = vsyncpa [#allocation4], 1 }
0x1cb9   :  { %1720 = vsyncpa [#allocation6], 1 }

</bundles_post_ra>
